<compile_context>
chip_gen: v7x
topology: tpu7x:2x2x1
jax: 0.10.0
libtpu: 0.0.40
codegen_flags: <defaults>
</compile_context>

<pallas_src>
import functools

import jax
import jax.numpy as jnp
from jax import lax
from jax.experimental import pallas as pl
from jax.experimental.pallas import tpu as pltpu

NEG_INF = -1e30
LEAKY_SLOPE = 0.2   # PyG GATConv default negative_slope

HID = 8       # conv1 per-head channels
HEADS1 = 8
HEADS2 = 8
HID2 = 64     # conv2 per-head channels


# --------------------------- in-kernel GAT layer ---------------------------- #
def _gat_layer(x, mask_add, w_aug, w_src_t, bias, heads, c, out_slab_ref=None):
    """One GATConv.

    w_aug   : (F_in, heads*c + heads)  = [W | w_dst]   (w_dst folds att_dst)
    w_src_t : (heads, F_in)            pre-transposed folded att_src weights
    bias    : (1, heads*c) if concat else (1, c)

    If out_slab_ref is given (concat=True path, conv1): per-head bias + ELU are
    applied on the small (N, c) tile and written directly into the lane-dense
    slab.  Otherwise (concat=False): returns mean-over-heads + bias.
    """
    # Fused linear transform: per-head features + e_dst columns in one matmul.
    hw = jnp.dot(x, w_aug, preferred_element_type=jnp.float32)   # (N, heads*c + heads)
    h_all = hw[:, :heads * c]                                    # (N, heads*c)
    e_dst = hw[:, heads * c:]                                    # (N, heads)
    # e_src_t[h, j] = <att_src_h, h_j>, source nodes on the lane axis (no transpose).
    e_src_t = lax.dot_general(w_src_t, x, (((1,), (1,)), ((), ())),
                              preferred_element_type=jnp.float32)  # (heads, N)

    acc = None
    for hd in range(heads):
        # logits[i, j] = e_dst[i] + e_src[j]  for edge j -> i
        logits = e_dst[:, hd:hd + 1] + e_src_t[hd:hd + 1, :]        # (N, N)
        logits = jnp.maximum(logits, LEAKY_SLOPE * logits) + mask_add
        m = jnp.max(logits, axis=1, keepdims=True)
        p = jnp.exp(logits - m)                                     # non-edges underflow to 0
        alpha = p * pl.reciprocal(jnp.sum(p, axis=1, keepdims=True), approx=False)
        ho = jnp.dot(alpha, h_all[:, hd * c:(hd + 1) * c],
                     preferred_element_type=jnp.float32)            # (N, c)
        if out_slab_ref is not None:
            # concat=True: fuse per-head bias + ELU on the small tile, store.
            hb = ho + bias[:, hd * c:(hd + 1) * c]
            out_slab_ref[:, hd * c:(hd + 1) * c] = jnp.where(
                hb > 0, hb, jnp.exp(jnp.minimum(hb, 0.0)) - 1.0)
        else:
            acc = ho if acc is None else acc + ho
    if out_slab_ref is None:
        return acc * (1.0 / heads) + bias
    return None


def _gatnet3_kernel(x_ref, mask_ref, w1_ref, ws1_ref, b1_ref,
                    w2_ref, ws2_ref, b2_ref, w3_ref, ws3_ref, b3_ref,
                    out_ref, h1_ref, *, num_classes):
    mask_add = mask_ref[...]                 # (N, N): 0 on edges, -1e30 otherwise

    # conv1 (heads=8, concat): bias + ELU fused into the head loop, outputs land
    # directly in the lane-dense (N, 64) VMEM slab h1_ref.
    _gat_layer(x_ref[...], mask_add, w1_ref[...], ws1_ref[...], b1_ref[...],
               HEADS1, HID, out_slab_ref=h1_ref)

    # conv2 (heads=8, concat=False -> mean over heads)
    h2 = _gat_layer(h1_ref[...], mask_add, w2_ref[...], ws2_ref[...], b2_ref[...],
                    HEADS2, HID2)

    # conv3 (single head) -> log_softmax
    h3 = _gat_layer(h2, mask_add, w3_ref[...], ws3_ref[...], b3_ref[...],
                    1, num_classes)
    mx = jnp.max(h3, axis=1, keepdims=True)
    lse = jnp.log(jnp.sum(jnp.exp(h3 - mx), axis=1, keepdims=True)) + mx
    out_ref[...] = (h3 - lse).astype(out_ref.dtype)


# ------------------------------- wrapper ------------------------------------ #
def _fold_attention(w, att_src, att_dst, heads, c):
    """Fold attention vectors into the weight matmul (done once, outside the kernel)."""
    f_in = w.shape[0]
    w3 = w.reshape(f_in, heads, c)
    w_dst = jnp.einsum("fhc,hc->fh", w3, att_dst)      # (F_in, heads)
    w_src_t = jnp.einsum("fhc,hc->hf", w3, att_src)    # (heads, F_in)
    w_aug = jnp.concatenate([w, w_dst], axis=1)        # (F_in, heads*c + heads)
    return w_aug.astype(jnp.float32), w_src_t.astype(jnp.float32)


def gatnet3_forward(params, x, adj, num_classes):
    n, f_in = x.shape
    mask_add = jnp.where(adj > 0, 0.0, NEG_INF).astype(jnp.float32)

    w1a, ws1 = _fold_attention(params["w1"], params["att_src1"], params["att_dst1"],
                               HEADS1, HID)
    w2a, ws2 = _fold_attention(params["w2"], params["att_src2"], params["att_dst2"],
                               HEADS2, HID2)
    w3a, ws3 = _fold_attention(params["w3"], params["att_src3"], params["att_dst3"],
                               1, num_classes)

    def layer_cost(f, heads, c):
        mm = 2 * n * f * (heads * c + heads) + 2 * heads * f * n   # linear + e_src
        attn = heads * (8 * n * n + 2 * n * n * c)                 # softmax + aggregate
        return mm + attn

    flops = (layer_cost(f_in, HEADS1, HID)
             + layer_cost(HEADS1 * HID, HEADS2, HID2)
             + layer_cost(HID2, 1, num_classes))
    transcendentals = (HEADS1 + HEADS2 + 1) * n * n + n * HEADS1 * HID + n * num_classes
    bytes_accessed = 4 * (x.size + mask_add.size + w1a.size + ws1.size + w2a.size
                          + ws2.size + w3a.size + ws3.size
                          + HEADS1 * HID + HID2 + num_classes + n * num_classes)

    kernel = functools.partial(_gatnet3_kernel, num_classes=num_classes)
    vmem = pl.BlockSpec(memory_space=pltpu.MemorySpace.VMEM)

    return pl.pallas_call(
        kernel,
        out_shape=jax.ShapeDtypeStruct((n, num_classes), jnp.float32),
        in_specs=[vmem] * 11,
        out_specs=vmem,
        scratch_shapes=[pltpu.VMEM((n, HEADS1 * HID), jnp.float32)],
        cost_estimate=pl.CostEstimate(flops=int(flops),
                                      transcendentals=int(transcendentals),
                                      bytes_accessed=int(bytes_accessed)),
    )(x.astype(jnp.float32), mask_add,
      w1a, ws1, params["b1"].reshape(1, -1),
      w2a, ws2, params["b2"].reshape(1, -1),
      w3a, ws3, params["b3"].reshape(1, -1))


# --------------------------- pure-JAX reference ----------------------------- #
def _ref_gat_layer(x, adj, w, att_src, att_dst, bias, heads, c, concat, act):
    h = x @ w
    n = x.shape[0]
    hr = h.reshape(n, heads, c)
    e_src = jnp.einsum("nhc,hc->hn", hr, att_src)
    e_dst = jnp.einsum("nhc,hc->hn", hr, att_dst)
    logits = e_dst[:, :, None] + e_src[:, None, :]           # (heads, N, N) [h, i, j]
    logits = jnp.where(logits > 0, logits, LEAKY_SLOPE * logits)
    logits = jnp.where(adj[None] > 0, logits, NEG_INF)
    m = jnp.max(logits, axis=2, keepdims=True)
    p = jnp.where(adj[None] > 0, jnp.exp(logits - m), 0.0)
    alpha = p / jnp.sum(p, axis=2, keepdims=True)
    out = jnp.einsum("hij,jhc->ihc", alpha, hr)              # (N, heads, C)
    out = out.reshape(n, heads * c) if concat else out.mean(axis=1)
    out = out + bias
    if act == "elu":
        out = jnp.where(out > 0, out, jnp.exp(jnp.minimum(out, 0.0)) - 1.0)
    elif act == "log_softmax":
        out = out - jax.scipy.special.logsumexp(out, axis=1, keepdims=True)
    return out


def _ref_forward(params, x, adj, num_classes):
    h = _ref_gat_layer(x, adj, params["w1"], params["att_src1"], params["att_dst1"],
                       params["b1"], HEADS1, HID, True, "elu")
    h = _ref_gat_layer(h, adj, params["w2"], params["att_src2"], params["att_dst2"],
                       params["b2"], HEADS2, HID2, False, None)
    return _ref_gat_layer(h, adj, params["w3"], params["att_src3"], params["att_dst3"],
                          params["b3"], 1, num_classes, False, "log_softmax")


# ---------------------------------- main ------------------------------------ #
if __name__ == "__main__":
    N, F_IN, NUM_CLASSES, E = 16, 8, 4, 48

    key = jax.random.PRNGKey(0)
    ks = jax.random.split(key, 12)

    x = jax.random.normal(ks[0], (N, F_IN), dtype=jnp.float32)
    src = jax.random.randint(ks[1], (E,), 0, N)
    dst = jax.random.randint(ks[2], (E,), 0, N)
    edge_index = jnp.stack([src, dst])                      # (2, E), PyG convention

    # Dense adjacency mask: adj[dst, src] = 1, plus self loops (PyG default).
    adj = jnp.zeros((N, N), dtype=jnp.float32)
    adj = adj.at[dst, src].set(1.0)
    adj = adj.at[jnp.arange(N), jnp.arange(N)].set(1.0)

    def glorot(k, shape):
        s = jnp.sqrt(6.0 / (shape[0] + shape[-1]))
        return jax.random.uniform(k, shape, jnp.float32, -s, s)

    params = {
        "w1": glorot(ks[3], (F_IN, HEADS1 * HID)),
        "att_src1": glorot(ks[4], (HEADS1, HID)),
        "att_dst1": glorot(ks[5], (HEADS1, HID)),
        "b1": jnp.zeros((HEADS1 * HID,), jnp.float32),
        "w2": glorot(ks[6], (HEADS1 * HID, HEADS2 * HID2)),
        "att_src2": glorot(ks[7], (HEADS2, HID2)),
        "att_dst2": glorot(ks[8], (HEADS2, HID2)),
        "b2": jnp.zeros((HID2,), jnp.float32),
        "w3": glorot(ks[9], (HID2, NUM_CLASSES)),
        "att_src3": glorot(ks[10], (1, NUM_CLASSES)),
        "att_dst3": glorot(ks[11], (1, NUM_CLASSES)),
        "b3": jnp.zeros((NUM_CLASSES,), jnp.float32),
    }

    out = jax.block_until_ready(gatnet3_forward(params, x, adj, NUM_CLASSES))
    ref = _ref_forward(params, x, adj, NUM_CLASSES)

    assert out.shape == (N, NUM_CLASSES)
    assert jnp.allclose(out, ref, atol=1e-4, rtol=1e-4), "mismatch vs reference"

    print("KERNEL_OK")
</pallas_src>

<mosaic_0001>
module attributes {stable_mosaic.version = 11 : i64} {
  func.func @_gatnet3_kernel(%arg0: memref<16x8xf32, #tpu.memory_space<vmem>>, %arg1: memref<16x16xf32, #tpu.memory_space<vmem>>, %arg2: memref<8x72xf32, #tpu.memory_space<vmem>>, %arg3: memref<8x8xf32, #tpu.memory_space<vmem>>, %arg4: memref<1x64xf32, #tpu.memory_space<vmem>>, %arg5: memref<64x520xf32, #tpu.memory_space<vmem>>, %arg6: memref<8x64xf32, #tpu.memory_space<vmem>>, %arg7: memref<1x64xf32, #tpu.memory_space<vmem>>, %arg8: memref<64x5xf32, #tpu.memory_space<vmem>>, %arg9: memref<1x64xf32, #tpu.memory_space<vmem>>, %arg10: memref<1x4xf32, #tpu.memory_space<vmem>>, %arg11: memref<16x4xf32, #tpu.memory_space<vmem>>, %arg12: memref<16x64xf32, #tpu.memory_space<vmem>>) attributes {dimension_semantics = [], scalar_prefetch = 0 : i64, scratch_operands = 1 : i64, tpu.core_type = #tpu.core_type<tc>} {
    %c0 = arith.constant 0 : index
    %c0_0 = arith.constant 0 : index
    %0 = vector.load %arg1[%c0, %c0_0] : memref<16x16xf32, #tpu.memory_space<vmem>>, vector<16x16xf32>
    %c0_1 = arith.constant 0 : index
    %c0_2 = arith.constant 0 : index
    %1 = vector.load %arg0[%c0_1, %c0_2] : memref<16x8xf32, #tpu.memory_space<vmem>>, vector<16x8xf32>
    %c0_3 = arith.constant 0 : index
    %c0_4 = arith.constant 0 : index
    %2 = vector.load %arg2[%c0_3, %c0_4] : memref<8x72xf32, #tpu.memory_space<vmem>>, vector<8x72xf32>
    %c0_5 = arith.constant 0 : index
    %c0_6 = arith.constant 0 : index
    %3 = vector.load %arg3[%c0_5, %c0_6] : memref<8x8xf32, #tpu.memory_space<vmem>>, vector<8x8xf32>
    %c0_7 = arith.constant 0 : index
    %c0_8 = arith.constant 0 : index
    %4 = vector.load %arg4[%c0_7, %c0_8] : memref<1x64xf32, #tpu.memory_space<vmem>>, vector<1x64xf32>
    %cst = arith.constant dense<0.000000e+00> : vector<16x72xf32>
    %5 = tpu.matmul %1, %2, %cst {dimension_numbers = #tpu.dot_dimension_numbers<[1], [0], [0], [1], [0, 0, 1, 1], [], []>} : vector<16x8xf32>, vector<8x72xf32>, vector<16x72xf32> -> vector<16x72xf32>
    %6 = vector.extract_strided_slice %5 {offsets = [0, 0], sizes = [16, 64], strides = [1, 1]} : vector<16x72xf32> to vector<16x64xf32>
    %7 = vector.extract_strided_slice %5 {offsets = [0, 64], sizes = [16, 8], strides = [1, 1]} : vector<16x72xf32> to vector<16x8xf32>
    %cst_9 = arith.constant dense<0.000000e+00> : vector<8x16xf32>
    %8 = tpu.matmul %3, %1, %cst_9 {dimension_numbers = #tpu.dot_dimension_numbers<[1], [1], [0], [0], [0, 0, 1, 0], [], []>} : vector<8x8xf32>, vector<16x8xf32>, vector<8x16xf32> -> vector<8x16xf32>
    %9 = vector.extract_strided_slice %7 {offsets = [0, 0], sizes = [16, 1], strides = [1, 1]} : vector<16x8xf32> to vector<16x1xf32>
    %10 = vector.extract_strided_slice %8 {offsets = [0, 0], sizes = [1, 16], strides = [1, 1]} : vector<8x16xf32> to vector<1x16xf32>
    %11 = vector.broadcast %9 : vector<16x1xf32> to vector<16x16xf32>
    %12 = vector.broadcast %10 : vector<1x16xf32> to vector<16x16xf32>
    %13 = arith.addf %11, %12 : vector<16x16xf32>
    %cst_10 = arith.constant 2.000000e-01 : f32
    %14 = vector.broadcast %cst_10 : f32 to vector<16x16xf32>
    %15 = arith.mulf %14, %13 : vector<16x16xf32>
    %16 = arith.maximumf %13, %15 : vector<16x16xf32>
    %17 = arith.addf %16, %0 : vector<16x16xf32>
    %cst_11 = arith.constant dense<0xFF800000> : vector<16xf32>
    %18 = vector.multi_reduction <maximumf>, %17, %cst_11 [1] : vector<16x16xf32> to vector<16xf32>
    %19 = vector.shape_cast %18 : vector<16xf32> to vector<16x1xf32>
    %20 = vector.broadcast %19 : vector<16x1xf32> to vector<16x16xf32>
    %21 = arith.subf %17, %20 : vector<16x16xf32>
    %22 = math.exp %21 : vector<16x16xf32>
    %cst_12 = arith.constant dense<0.000000e+00> : vector<16xf32>
    %23 = vector.multi_reduction <add>, %22, %cst_12 [1] : vector<16x16xf32> to vector<16xf32>
    %24 = vector.shape_cast %23 : vector<16xf32> to vector<16x1xf32>
    %25 = tpu.reciprocal %24 : vector<16x1xf32> -> vector<16x1xf32>
    %26 = vector.broadcast %25 : vector<16x1xf32> to vector<16x16xf32>
    %27 = arith.mulf %22, %26 : vector<16x16xf32>
    %28 = vector.extract_strided_slice %6 {offsets = [0, 0], sizes = [16, 8], strides = [1, 1]} : vector<16x64xf32> to vector<16x8xf32>
    %cst_13 = arith.constant dense<0.000000e+00> : vector<16x8xf32>
    %29 = tpu.matmul %27, %28, %cst_13 {dimension_numbers = #tpu.dot_dimension_numbers<[1], [0], [0], [1], [0, 0, 1, 1], [], []>} : vector<16x16xf32>, vector<16x8xf32>, vector<16x8xf32> -> vector<16x8xf32>
    %30 = vector.extract_strided_slice %4 {offsets = [0, 0], sizes = [1, 8], strides = [1, 1]} : vector<1x64xf32> to vector<1x8xf32>
    %31 = vector.broadcast %30 : vector<1x8xf32> to vector<16x8xf32>
    %32 = arith.addf %29, %31 : vector<16x8xf32>
    %cst_14 = arith.constant 0.000000e+00 : f32
    %33 = vector.broadcast %cst_14 : f32 to vector<16x8xf32>
    %34 = arith.cmpf ogt, %32, %33 : vector<16x8xf32>
    %cst_15 = arith.constant 0.000000e+00 : f32
    %35 = vector.broadcast %cst_15 : f32 to vector<16x8xf32>
    %36 = arith.minimumf %32, %35 : vector<16x8xf32>
    %37 = math.exp %36 : vector<16x8xf32>
    %cst_16 = arith.constant 1.000000e+00 : f32
    %38 = vector.broadcast %cst_16 : f32 to vector<16x8xf32>
    %39 = arith.subf %37, %38 : vector<16x8xf32>
    %40 = arith.select %34, %32, %39 : vector<16x8xi1>, vector<16x8xf32>
    %c0_17 = arith.constant 0 : index
    %c0_18 = arith.constant 0 : index
    %41 = vector.load %arg12[%c0_17, %c0_18] : memref<16x64xf32, #tpu.memory_space<vmem>>, vector<16x8xf32>
    tpu.vector_store %arg12[%c0_17, %c0_18], %40 {strides = array<i32>} : memref<16x64xf32, #tpu.memory_space<vmem>>, vector<16x8xf32>,
    %42 = vector.extract_strided_slice %7 {offsets = [0, 1], sizes = [16, 1], strides = [1, 1]} : vector<16x8xf32> to vector<16x1xf32>
    %43 = vector.extract_strided_slice %8 {offsets = [1, 0], sizes = [1, 16], strides = [1, 1]} : vector<8x16xf32> to vector<1x16xf32>
    %44 = vector.broadcast %42 : vector<16x1xf32> to vector<16x16xf32>
    %45 = vector.broadcast %43 : vector<1x16xf32> to vector<16x16xf32>
    %46 = arith.addf %44, %45 : vector<16x16xf32>
    %cst_19 = arith.constant 2.000000e-01 : f32
    %47 = vector.broadcast %cst_19 : f32 to vector<16x16xf32>
    %48 = arith.mulf %47, %46 : vector<16x16xf32>
    %49 = arith.maximumf %46, %48 : vector<16x16xf32>
    %50 = arith.addf %49, %0 : vector<16x16xf32>
    %cst_20 = arith.constant dense<0xFF800000> : vector<16xf32>
    %51 = vector.multi_reduction <maximumf>, %50, %cst_20 [1] : vector<16x16xf32> to vector<16xf32>
    %52 = vector.shape_cast %51 : vector<16xf32> to vector<16x1xf32>
    %53 = vector.broadcast %52 : vector<16x1xf32> to vector<16x16xf32>
    %54 = arith.subf %50, %53 : vector<16x16xf32>
    %55 = math.exp %54 : vector<16x16xf32>
    %cst_21 = arith.constant dense<0.000000e+00> : vector<16xf32>
    %56 = vector.multi_reduction <add>, %55, %cst_21 [1] : vector<16x16xf32> to vector<16xf32>
    %57 = vector.shape_cast %56 : vector<16xf32> to vector<16x1xf32>
    %58 = tpu.reciprocal %57 : vector<16x1xf32> -> vector<16x1xf32>
    %59 = vector.broadcast %58 : vector<16x1xf32> to vector<16x16xf32>
    %60 = arith.mulf %55, %59 : vector<16x16xf32>
    %61 = vector.extract_strided_slice %6 {offsets = [0, 8], sizes = [16, 8], strides = [1, 1]} : vector<16x64xf32> to vector<16x8xf32>
    %cst_22 = arith.constant dense<0.000000e+00> : vector<16x8xf32>
    %62 = tpu.matmul %60, %61, %cst_22 {dimension_numbers = #tpu.dot_dimension_numbers<[1], [0], [0], [1], [0, 0, 1, 1], [], []>} : vector<16x16xf32>, vector<16x8xf32>, vector<16x8xf32> -> vector<16x8xf32>
    %63 = vector.extract_strided_slice %4 {offsets = [0, 8], sizes = [1, 8], strides = [1, 1]} : vector<1x64xf32> to vector<1x8xf32>
    %64 = vector.broadcast %63 : vector<1x8xf32> to vector<16x8xf32>
    %65 = arith.addf %62, %64 : vector<16x8xf32>
    %cst_23 = arith.constant 0.000000e+00 : f32
    %66 = vector.broadcast %cst_23 : f32 to vector<16x8xf32>
    %67 = arith.cmpf ogt, %65, %66 : vector<16x8xf32>
    %cst_24 = arith.constant 0.000000e+00 : f32
    %68 = vector.broadcast %cst_24 : f32 to vector<16x8xf32>
    %69 = arith.minimumf %65, %68 : vector<16x8xf32>
    %70 = math.exp %69 : vector<16x8xf32>
    %cst_25 = arith.constant 1.000000e+00 : f32
    %71 = vector.broadcast %cst_25 : f32 to vector<16x8xf32>
    %72 = arith.subf %70, %71 : vector<16x8xf32>
    %73 = arith.select %67, %65, %72 : vector<16x8xi1>, vector<16x8xf32>
    %c0_26 = arith.constant 0 : index
    %c8 = arith.constant 8 : index
    %74 = vector.load %arg12[%c0_26, %c8] : memref<16x64xf32, #tpu.memory_space<vmem>>, vector<16x8xf32>
    tpu.vector_store %arg12[%c0_26, %c8], %73 {strides = array<i32>} : memref<16x64xf32, #tpu.memory_space<vmem>>, vector<16x8xf32>,
    %75 = vector.extract_strided_slice %7 {offsets = [0, 2], sizes = [16, 1], strides = [1, 1]} : vector<16x8xf32> to vector<16x1xf32>
    %76 = vector.extract_strided_slice %8 {offsets = [2, 0], sizes = [1, 16], strides = [1, 1]} : vector<8x16xf32> to vector<1x16xf32>
    %77 = vector.broadcast %75 : vector<16x1xf32> to vector<16x16xf32>
    %78 = vector.broadcast %76 : vector<1x16xf32> to vector<16x16xf32>
    %79 = arith.addf %77, %78 : vector<16x16xf32>
    %cst_27 = arith.constant 2.000000e-01 : f32
    %80 = vector.broadcast %cst_27 : f32 to vector<16x16xf32>
    %81 = arith.mulf %80, %79 : vector<16x16xf32>
    %82 = arith.maximumf %79, %81 : vector<16x16xf32>
    %83 = arith.addf %82, %0 : vector<16x16xf32>
    %cst_28 = arith.constant dense<0xFF800000> : vector<16xf32>
    %84 = vector.multi_reduction <maximumf>, %83, %cst_28 [1] : vector<16x16xf32> to vector<16xf32>
    %85 = vector.shape_cast %84 : vector<16xf32> to vector<16x1xf32>
    %86 = vector.broadcast %85 : vector<16x1xf32> to vector<16x16xf32>
    %87 = arith.subf %83, %86 : vector<16x16xf32>
    %88 = math.exp %87 : vector<16x16xf32>
    %cst_29 = arith.constant dense<0.000000e+00> : vector<16xf32>
    %89 = vector.multi_reduction <add>, %88, %cst_29 [1] : vector<16x16xf32> to vector<16xf32>
    %90 = vector.shape_cast %89 : vector<16xf32> to vector<16x1xf32>
    %91 = tpu.reciprocal %90 : vector<16x1xf32> -> vector<16x1xf32>
    %92 = vector.broadcast %91 : vector<16x1xf32> to vector<16x16xf32>
    %93 = arith.mulf %88, %92 : vector<16x16xf32>
    %94 = vector.extract_strided_slice %6 {offsets = [0, 16], sizes = [16, 8], strides = [1, 1]} : vector<16x64xf32> to vector<16x8xf32>
    %cst_30 = arith.constant dense<0.000000e+00> : vector<16x8xf32>
    %95 = tpu.matmul %93, %94, %cst_30 {dimension_numbers = #tpu.dot_dimension_numbers<[1], [0], [0], [1], [0, 0, 1, 1], [], []>} : vector<16x16xf32>, vector<16x8xf32>, vector<16x8xf32> -> vector<16x8xf32>
    %96 = vector.extract_strided_slice %4 {offsets = [0, 16], sizes = [1, 8], strides = [1, 1]} : vector<1x64xf32> to vector<1x8xf32>
    %97 = vector.broadcast %96 : vector<1x8xf32> to vector<16x8xf32>
    %98 = arith.addf %95, %97 : vector<16x8xf32>
    %cst_31 = arith.constant 0.000000e+00 : f32
    %99 = vector.broadcast %cst_31 : f32 to vector<16x8xf32>
    %100 = arith.cmpf ogt, %98, %99 : vector<16x8xf32>
    %cst_32 = arith.constant 0.000000e+00 : f32
    %101 = vector.broadcast %cst_32 : f32 to vector<16x8xf32>
    %102 = arith.minimumf %98, %101 : vector<16x8xf32>
    %103 = math.exp %102 : vector<16x8xf32>
    %cst_33 = arith.constant 1.000000e+00 : f32
    %104 = vector.broadcast %cst_33 : f32 to vector<16x8xf32>
    %105 = arith.subf %103, %104 : vector<16x8xf32>
    %106 = arith.select %100, %98, %105 : vector<16x8xi1>, vector<16x8xf32>
    %c0_34 = arith.constant 0 : index
    %c16 = arith.constant 16 : index
    %107 = vector.load %arg12[%c0_34, %c16] : memref<16x64xf32, #tpu.memory_space<vmem>>, vector<16x8xf32>
    tpu.vector_store %arg12[%c0_34, %c16], %106 {strides = array<i32>} : memref<16x64xf32, #tpu.memory_space<vmem>>, vector<16x8xf32>,
    %108 = vector.extract_strided_slice %7 {offsets = [0, 3], sizes = [16, 1], strides = [1, 1]} : vector<16x8xf32> to vector<16x1xf32>
    %109 = vector.extract_strided_slice %8 {offsets = [3, 0], sizes = [1, 16], strides = [1, 1]} : vector<8x16xf32> to vector<1x16xf32>
    %110 = vector.broadcast %108 : vector<16x1xf32> to vector<16x16xf32>
    %111 = vector.broadcast %109 : vector<1x16xf32> to vector<16x16xf32>
    %112 = arith.addf %110, %111 : vector<16x16xf32>
    %cst_35 = arith.constant 2.000000e-01 : f32
    %113 = vector.broadcast %cst_35 : f32 to vector<16x16xf32>
    %114 = arith.mulf %113, %112 : vector<16x16xf32>
    %115 = arith.maximumf %112, %114 : vector<16x16xf32>
    %116 = arith.addf %115, %0 : vector<16x16xf32>
    %cst_36 = arith.constant dense<0xFF800000> : vector<16xf32>
    %117 = vector.multi_reduction <maximumf>, %116, %cst_36 [1] : vector<16x16xf32> to vector<16xf32>
    %118 = vector.shape_cast %117 : vector<16xf32> to vector<16x1xf32>
    %119 = vector.broadcast %118 : vector<16x1xf32> to vector<16x16xf32>
    %120 = arith.subf %116, %119 : vector<16x16xf32>
    %121 = math.exp %120 : vector<16x16xf32>
    %cst_37 = arith.constant dense<0.000000e+00> : vector<16xf32>
    %122 = vector.multi_reduction <add>, %121, %cst_37 [1] : vector<16x16xf32> to vector<16xf32>
    %123 = vector.shape_cast %122 : vector<16xf32> to vector<16x1xf32>
    %124 = tpu.reciprocal %123 : vector<16x1xf32> -> vector<16x1xf32>
    %125 = vector.broadcast %124 : vector<16x1xf32> to vector<16x16xf32>
    %126 = arith.mulf %121, %125 : vector<16x16xf32>
    %127 = vector.extract_strided_slice %6 {offsets = [0, 24], sizes = [16, 8], strides = [1, 1]} : vector<16x64xf32> to vector<16x8xf32>
    %cst_38 = arith.constant dense<0.000000e+00> : vector<16x8xf32>
    %128 = tpu.matmul %126, %127, %cst_38 {dimension_numbers = #tpu.dot_dimension_numbers<[1], [0], [0], [1], [0, 0, 1, 1], [], []>} : vector<16x16xf32>, vector<16x8xf32>, vector<16x8xf32> -> vector<16x8xf32>
    %129 = vector.extract_strided_slice %4 {offsets = [0, 24], sizes = [1, 8], strides = [1, 1]} : vector<1x64xf32> to vector<1x8xf32>
    %130 = vector.broadcast %129 : vector<1x8xf32> to vector<16x8xf32>
    %131 = arith.addf %128, %130 : vector<16x8xf32>
    %cst_39 = arith.constant 0.000000e+00 : f32
    %132 = vector.broadcast %cst_39 : f32 to vector<16x8xf32>
    %133 = arith.cmpf ogt, %131, %132 : vector<16x8xf32>
    %cst_40 = arith.constant 0.000000e+00 : f32
    %134 = vector.broadcast %cst_40 : f32 to vector<16x8xf32>
    %135 = arith.minimumf %131, %134 : vector<16x8xf32>
    %136 = math.exp %135 : vector<16x8xf32>
    %cst_41 = arith.constant 1.000000e+00 : f32
    %137 = vector.broadcast %cst_41 : f32 to vector<16x8xf32>
    %138 = arith.subf %136, %137 : vector<16x8xf32>
    %139 = arith.select %133, %131, %138 : vector<16x8xi1>, vector<16x8xf32>
    %c0_42 = arith.constant 0 : index
    %c24 = arith.constant 24 : index
    %140 = vector.load %arg12[%c0_42, %c24] : memref<16x64xf32, #tpu.memory_space<vmem>>, vector<16x8xf32>
    tpu.vector_store %arg12[%c0_42, %c24], %139 {strides = array<i32>} : memref<16x64xf32, #tpu.memory_space<vmem>>, vector<16x8xf32>,
    %141 = vector.extract_strided_slice %7 {offsets = [0, 4], sizes = [16, 1], strides = [1, 1]} : vector<16x8xf32> to vector<16x1xf32>
    %142 = vector.extract_strided_slice %8 {offsets = [4, 0], sizes = [1, 16], strides = [1, 1]} : vector<8x16xf32> to vector<1x16xf32>
    %143 = vector.broadcast %141 : vector<16x1xf32> to vector<16x16xf32>
    %144 = vector.broadcast %142 : vector<1x16xf32> to vector<16x16xf32>
    %145 = arith.addf %143, %144 : vector<16x16xf32>
    %cst_43 = arith.constant 2.000000e-01 : f32
    %146 = vector.broadcast %cst_43 : f32 to vector<16x16xf32>
    %147 = arith.mulf %146, %145 : vector<16x16xf32>
    %148 = arith.maximumf %145, %147 : vector<16x16xf32>
    %149 = arith.addf %148, %0 : vector<16x16xf32>
    %cst_44 = arith.constant dense<0xFF800000> : vector<16xf32>
    %150 = vector.multi_reduction <maximumf>, %149, %cst_44 [1] : vector<16x16xf32> to vector<16xf32>
    %151 = vector.shape_cast %150 : vector<16xf32> to vector<16x1xf32>
    %152 = vector.broadcast %151 : vector<16x1xf32> to vector<16x16xf32>
    %153 = arith.subf %149, %152 : vector<16x16xf32>
    %154 = math.exp %153 : vector<16x16xf32>
    %cst_45 = arith.constant dense<0.000000e+00> : vector<16xf32>
    %155 = vector.multi_reduction <add>, %154, %cst_45 [1] : vector<16x16xf32> to vector<16xf32>
    %156 = vector.shape_cast %155 : vector<16xf32> to vector<16x1xf32>
    %157 = tpu.reciprocal %156 : vector<16x1xf32> -> vector<16x1xf32>
    %158 = vector.broadcast %157 : vector<16x1xf32> to vector<16x16xf32>
    %159 = arith.mulf %154, %158 : vector<16x16xf32>
    %160 = vector.extract_strided_slice %6 {offsets = [0, 32], sizes = [16, 8], strides = [1, 1]} : vector<16x64xf32> to vector<16x8xf32>
    %cst_46 = arith.constant dense<0.000000e+00> : vector<16x8xf32>
    %161 = tpu.matmul %159, %160, %cst_46 {dimension_numbers = #tpu.dot_dimension_numbers<[1], [0], [0], [1], [0, 0, 1, 1], [], []>} : vector<16x16xf32>, vector<16x8xf32>, vector<16x8xf32> -> vector<16x8xf32>
    %162 = vector.extract_strided_slice %4 {offsets = [0, 32], sizes = [1, 8], strides = [1, 1]} : vector<1x64xf32> to vector<1x8xf32>
    %163 = vector.broadcast %162 : vector<1x8xf32> to vector<16x8xf32>
    %164 = arith.addf %161, %163 : vector<16x8xf32>
    %cst_47 = arith.constant 0.000000e+00 : f32
    %165 = vector.broadcast %cst_47 : f32 to vector<16x8xf32>
    %166 = arith.cmpf ogt, %164, %165 : vector<16x8xf32>
    %cst_48 = arith.constant 0.000000e+00 : f32
    %167 = vector.broadcast %cst_48 : f32 to vector<16x8xf32>
    %168 = arith.minimumf %164, %167 : vector<16x8xf32>
    %169 = math.exp %168 : vector<16x8xf32>
    %cst_49 = arith.constant 1.000000e+00 : f32
    %170 = vector.broadcast %cst_49 : f32 to vector<16x8xf32>
    %171 = arith.subf %169, %170 : vector<16x8xf32>
    %172 = arith.select %166, %164, %171 : vector<16x8xi1>, vector<16x8xf32>
    %c0_50 = arith.constant 0 : index
    %c32 = arith.constant 32 : index
    %173 = vector.load %arg12[%c0_50, %c32] : memref<16x64xf32, #tpu.memory_space<vmem>>, vector<16x8xf32>
    tpu.vector_store %arg12[%c0_50, %c32], %172 {strides = array<i32>} : memref<16x64xf32, #tpu.memory_space<vmem>>, vector<16x8xf32>,
    %174 = vector.extract_strided_slice %7 {offsets = [0, 5], sizes = [16, 1], strides = [1, 1]} : vector<16x8xf32> to vector<16x1xf32>
    %175 = vector.extract_strided_slice %8 {offsets = [5, 0], sizes = [1, 16], strides = [1, 1]} : vector<8x16xf32> to vector<1x16xf32>
    %176 = vector.broadcast %174 : vector<16x1xf32> to vector<16x16xf32>
    %177 = vector.broadcast %175 : vector<1x16xf32> to vector<16x16xf32>
    %178 = arith.addf %176, %177 : vector<16x16xf32>
    %cst_51 = arith.constant 2.000000e-01 : f32
    %179 = vector.broadcast %cst_51 : f32 to vector<16x16xf32>
    %180 = arith.mulf %179, %178 : vector<16x16xf32>
    %181 = arith.maximumf %178, %180 : vector<16x16xf32>
    %182 = arith.addf %181, %0 : vector<16x16xf32>
    %cst_52 = arith.constant dense<0xFF800000> : vector<16xf32>
    %183 = vector.multi_reduction <maximumf>, %182, %cst_52 [1] : vector<16x16xf32> to vector<16xf32>
    %184 = vector.shape_cast %183 : vector<16xf32> to vector<16x1xf32>
    %185 = vector.broadcast %184 : vector<16x1xf32> to vector<16x16xf32>
    %186 = arith.subf %182, %185 : vector<16x16xf32>
    %187 = math.exp %186 : vector<16x16xf32>
    %cst_53 = arith.constant dense<0.000000e+00> : vector<16xf32>
    %188 = vector.multi_reduction <add>, %187, %cst_53 [1] : vector<16x16xf32> to vector<16xf32>
    %189 = vector.shape_cast %188 : vector<16xf32> to vector<16x1xf32>
    %190 = tpu.reciprocal %189 : vector<16x1xf32> -> vector<16x1xf32>
    %191 = vector.broadcast %190 : vector<16x1xf32> to vector<16x16xf32>
    %192 = arith.mulf %187, %191 : vector<16x16xf32>
    %193 = vector.extract_strided_slice %6 {offsets = [0, 40], sizes = [16, 8], strides = [1, 1]} : vector<16x64xf32> to vector<16x8xf32>
    %cst_54 = arith.constant dense<0.000000e+00> : vector<16x8xf32>
    %194 = tpu.matmul %192, %193, %cst_54 {dimension_numbers = #tpu.dot_dimension_numbers<[1], [0], [0], [1], [0, 0, 1, 1], [], []>} : vector<16x16xf32>, vector<16x8xf32>, vector<16x8xf32> -> vector<16x8xf32>
    %195 = vector.extract_strided_slice %4 {offsets = [0, 40], sizes = [1, 8], strides = [1, 1]} : vector<1x64xf32> to vector<1x8xf32>
    %196 = vector.broadcast %195 : vector<1x8xf32> to vector<16x8xf32>
    %197 = arith.addf %194, %196 : vector<16x8xf32>
    %cst_55 = arith.constant 0.000000e+00 : f32
    %198 = vector.broadcast %cst_55 : f32 to vector<16x8xf32>
    %199 = arith.cmpf ogt, %197, %198 : vector<16x8xf32>
    %cst_56 = arith.constant 0.000000e+00 : f32
    %200 = vector.broadcast %cst_56 : f32 to vector<16x8xf32>
    %201 = arith.minimumf %197, %200 : vector<16x8xf32>
    %202 = math.exp %201 : vector<16x8xf32>
    %cst_57 = arith.constant 1.000000e+00 : f32
    %203 = vector.broadcast %cst_57 : f32 to vector<16x8xf32>
    %204 = arith.subf %202, %203 : vector<16x8xf32>
    %205 = arith.select %199, %197, %204 : vector<16x8xi1>, vector<16x8xf32>
    %c0_58 = arith.constant 0 : index
    %c40 = arith.constant 40 : index
    %206 = vector.load %arg12[%c0_58, %c40] : memref<16x64xf32, #tpu.memory_space<vmem>>, vector<16x8xf32>
    tpu.vector_store %arg12[%c0_58, %c40], %205 {strides = array<i32>} : memref<16x64xf32, #tpu.memory_space<vmem>>, vector<16x8xf32>,
    %207 = vector.extract_strided_slice %7 {offsets = [0, 6], sizes = [16, 1], strides = [1, 1]} : vector<16x8xf32> to vector<16x1xf32>
    %208 = vector.extract_strided_slice %8 {offsets = [6, 0], sizes = [1, 16], strides = [1, 1]} : vector<8x16xf32> to vector<1x16xf32>
    %209 = vector.broadcast %207 : vector<16x1xf32> to vector<16x16xf32>
    %210 = vector.broadcast %208 : vector<1x16xf32> to vector<16x16xf32>
    %211 = arith.addf %209, %210 : vector<16x16xf32>
    %cst_59 = arith.constant 2.000000e-01 : f32
    %212 = vector.broadcast %cst_59 : f32 to vector<16x16xf32>
    %213 = arith.mulf %212, %211 : vector<16x16xf32>
    %214 = arith.maximumf %211, %213 : vector<16x16xf32>
    %215 = arith.addf %214, %0 : vector<16x16xf32>
    %cst_60 = arith.constant dense<0xFF800000> : vector<16xf32>
    %216 = vector.multi_reduction <maximumf>, %215, %cst_60 [1] : vector<16x16xf32> to vector<16xf32>
    %217 = vector.shape_cast %216 : vector<16xf32> to vector<16x1xf32>
    %218 = vector.broadcast %217 : vector<16x1xf32> to vector<16x16xf32>
    %219 = arith.subf %215, %218 : vector<16x16xf32>
    %220 = math.exp %219 : vector<16x16xf32>
    %cst_61 = arith.constant dense<0.000000e+00> : vector<16xf32>
    %221 = vector.multi_reduction <add>, %220, %cst_61 [1] : vector<16x16xf32> to vector<16xf32>
    %222 = vector.shape_cast %221 : vector<16xf32> to vector<16x1xf32>
    %223 = tpu.reciprocal %222 : vector<16x1xf32> -> vector<16x1xf32>
    %224 = vector.broadcast %223 : vector<16x1xf32> to vector<16x16xf32>
    %225 = arith.mulf %220, %224 : vector<16x16xf32>
    %226 = vector.extract_strided_slice %6 {offsets = [0, 48], sizes = [16, 8], strides = [1, 1]} : vector<16x64xf32> to vector<16x8xf32>
    %cst_62 = arith.constant dense<0.000000e+00> : vector<16x8xf32>
    %227 = tpu.matmul %225, %226, %cst_62 {dimension_numbers = #tpu.dot_dimension_numbers<[1], [0], [0], [1], [0, 0, 1, 1], [], []>} : vector<16x16xf32>, vector<16x8xf32>, vector<16x8xf32> -> vector<16x8xf32>
    %228 = vector.extract_strided_slice %4 {offsets = [0, 48], sizes = [1, 8], strides = [1, 1]} : vector<1x64xf32> to vector<1x8xf32>
    %229 = vector.broadcast %228 : vector<1x8xf32> to vector<16x8xf32>
    %230 = arith.addf %227, %229 : vector<16x8xf32>
    %cst_63 = arith.constant 0.000000e+00 : f32
    %231 = vector.broadcast %cst_63 : f32 to vector<16x8xf32>
    %232 = arith.cmpf ogt, %230, %231 : vector<16x8xf32>
    %cst_64 = arith.constant 0.000000e+00 : f32
    %233 = vector.broadcast %cst_64 : f32 to vector<16x8xf32>
    %234 = arith.minimumf %230, %233 : vector<16x8xf32>
    %235 = math.exp %234 : vector<16x8xf32>
    %cst_65 = arith.constant 1.000000e+00 : f32
    %236 = vector.broadcast %cst_65 : f32 to vector<16x8xf32>
    %237 = arith.subf %235, %236 : vector<16x8xf32>
    %238 = arith.select %232, %230, %237 : vector<16x8xi1>, vector<16x8xf32>
    %c0_66 = arith.constant 0 : index
    %c48 = arith.constant 48 : index
    %239 = vector.load %arg12[%c0_66, %c48] : memref<16x64xf32, #tpu.memory_space<vmem>>, vector<16x8xf32>
    tpu.vector_store %arg12[%c0_66, %c48], %238 {strides = array<i32>} : memref<16x64xf32, #tpu.memory_space<vmem>>, vector<16x8xf32>,
    %240 = vector.extract_strided_slice %7 {offsets = [0, 7], sizes = [16, 1], strides = [1, 1]} : vector<16x8xf32> to vector<16x1xf32>
    %241 = vector.extract_strided_slice %8 {offsets = [7, 0], sizes = [1, 16], strides = [1, 1]} : vector<8x16xf32> to vector<1x16xf32>
    %242 = vector.broadcast %240 : vector<16x1xf32> to vector<16x16xf32>
    %243 = vector.broadcast %241 : vector<1x16xf32> to vector<16x16xf32>
    %244 = arith.addf %242, %243 : vector<16x16xf32>
    %cst_67 = arith.constant 2.000000e-01 : f32
    %245 = vector.broadcast %cst_67 : f32 to vector<16x16xf32>
    %246 = arith.mulf %245, %244 : vector<16x16xf32>
    %247 = arith.maximumf %244, %246 : vector<16x16xf32>
    %248 = arith.addf %247, %0 : vector<16x16xf32>
    %cst_68 = arith.constant dense<0xFF800000> : vector<16xf32>
    %249 = vector.multi_reduction <maximumf>, %248, %cst_68 [1] : vector<16x16xf32> to vector<16xf32>
    %250 = vector.shape_cast %249 : vector<16xf32> to vector<16x1xf32>
    %251 = vector.broadcast %250 : vector<16x1xf32> to vector<16x16xf32>
    %252 = arith.subf %248, %251 : vector<16x16xf32>
    %253 = math.exp %252 : vector<16x16xf32>
    %cst_69 = arith.constant dense<0.000000e+00> : vector<16xf32>
    %254 = vector.multi_reduction <add>, %253, %cst_69 [1] : vector<16x16xf32> to vector<16xf32>
    %255 = vector.shape_cast %254 : vector<16xf32> to vector<16x1xf32>
    %256 = tpu.reciprocal %255 : vector<16x1xf32> -> vector<16x1xf32>
    %257 = vector.broadcast %256 : vector<16x1xf32> to vector<16x16xf32>
    %258 = arith.mulf %253, %257 : vector<16x16xf32>
    %259 = vector.extract_strided_slice %6 {offsets = [0, 56], sizes = [16, 8], strides = [1, 1]} : vector<16x64xf32> to vector<16x8xf32>
    %cst_70 = arith.constant dense<0.000000e+00> : vector<16x8xf32>
    %260 = tpu.matmul %258, %259, %cst_70 {dimension_numbers = #tpu.dot_dimension_numbers<[1], [0], [0], [1], [0, 0, 1, 1], [], []>} : vector<16x16xf32>, vector<16x8xf32>, vector<16x8xf32> -> vector<16x8xf32>
    %261 = vector.extract_strided_slice %4 {offsets = [0, 56], sizes = [1, 8], strides = [1, 1]} : vector<1x64xf32> to vector<1x8xf32>
    %262 = vector.broadcast %261 : vector<1x8xf32> to vector<16x8xf32>
    %263 = arith.addf %260, %262 : vector<16x8xf32>
    %cst_71 = arith.constant 0.000000e+00 : f32
    %264 = vector.broadcast %cst_71 : f32 to vector<16x8xf32>
    %265 = arith.cmpf ogt, %263, %264 : vector<16x8xf32>
    %cst_72 = arith.constant 0.000000e+00 : f32
    %266 = vector.broadcast %cst_72 : f32 to vector<16x8xf32>
    %267 = arith.minimumf %263, %266 : vector<16x8xf32>
    %268 = math.exp %267 : vector<16x8xf32>
    %cst_73 = arith.constant 1.000000e+00 : f32
    %269 = vector.broadcast %cst_73 : f32 to vector<16x8xf32>
    %270 = arith.subf %268, %269 : vector<16x8xf32>
    %271 = arith.select %265, %263, %270 : vector<16x8xi1>, vector<16x8xf32>
    %c0_74 = arith.constant 0 : index
    %c56 = arith.constant 56 : index
    %272 = vector.load %arg12[%c0_74, %c56] : memref<16x64xf32, #tpu.memory_space<vmem>>, vector<16x8xf32>
    tpu.vector_store %arg12[%c0_74, %c56], %271 {strides = array<i32>} : memref<16x64xf32, #tpu.memory_space<vmem>>, vector<16x8xf32>,
    %c0_75 = arith.constant 0 : index
    %c0_76 = arith.constant 0 : index
    %273 = vector.load %arg12[%c0_75, %c0_76] : memref<16x64xf32, #tpu.memory_space<vmem>>, vector<16x64xf32>
    %c0_77 = arith.constant 0 : index
    %c0_78 = arith.constant 0 : index
    %274 = vector.load %arg5[%c0_77, %c0_78] : memref<64x520xf32, #tpu.memory_space<vmem>>, vector<64x520xf32>
    %c0_79 = arith.constant 0 : index
    %c0_80 = arith.constant 0 : index
    %275 = vector.load %arg6[%c0_79, %c0_80] : memref<8x64xf32, #tpu.memory_space<vmem>>, vector<8x64xf32>
    %c0_81 = arith.constant 0 : index
    %c0_82 = arith.constant 0 : index
    %276 = vector.load %arg7[%c0_81, %c0_82] : memref<1x64xf32, #tpu.memory_space<vmem>>, vector<1x64xf32>
    %cst_83 = arith.constant dense<0.000000e+00> : vector<16x520xf32>
    %277 = tpu.matmul %273, %274, %cst_83 {dimension_numbers = #tpu.dot_dimension_numbers<[1], [0], [0], [1], [0, 0, 1, 1], [], []>} : vector<16x64xf32>, vector<64x520xf32>, vector<16x520xf32> -> vector<16x520xf32>
    %278 = vector.extract_strided_slice %277 {offsets = [0, 0], sizes = [16, 512], strides = [1, 1]} : vector<16x520xf32> to vector<16x512xf32>
    %279 = vector.extract_strided_slice %277 {offsets = [0, 512], sizes = [16, 8], strides = [1, 1]} : vector<16x520xf32> to vector<16x8xf32>
    %cst_84 = arith.constant dense<0.000000e+00> : vector<8x16xf32>
    %280 = tpu.matmul %275, %273, %cst_84 {dimension_numbers = #tpu.dot_dimension_numbers<[1], [1], [0], [0], [0, 0, 1, 0], [], []>} : vector<8x64xf32>, vector<16x64xf32>, vector<8x16xf32> -> vector<8x16xf32>
    %281 = vector.extract_strided_slice %279 {offsets = [0, 0], sizes = [16, 1], strides = [1, 1]} : vector<16x8xf32> to vector<16x1xf32>
    %282 = vector.extract_strided_slice %280 {offsets = [0, 0], sizes = [1, 16], strides = [1, 1]} : vector<8x16xf32> to vector<1x16xf32>
    %283 = vector.broadcast %281 : vector<16x1xf32> to vector<16x16xf32>
    %284 = vector.broadcast %282 : vector<1x16xf32> to vector<16x16xf32>
    %285 = arith.addf %283, %284 : vector<16x16xf32>
    %cst_85 = arith.constant 2.000000e-01 : f32
    %286 = vector.broadcast %cst_85 : f32 to vector<16x16xf32>
    %287 = arith.mulf %286, %285 : vector<16x16xf32>
    %288 = arith.maximumf %285, %287 : vector<16x16xf32>
    %289 = arith.addf %288, %0 : vector<16x16xf32>
    %cst_86 = arith.constant dense<0xFF800000> : vector<16xf32>
    %290 = vector.multi_reduction <maximumf>, %289, %cst_86 [1] : vector<16x16xf32> to vector<16xf32>
    %291 = vector.shape_cast %290 : vector<16xf32> to vector<16x1xf32>
    %292 = vector.broadcast %291 : vector<16x1xf32> to vector<16x16xf32>
    %293 = arith.subf %289, %292 : vector<16x16xf32>
    %294 = math.exp %293 : vector<16x16xf32>
    %cst_87 = arith.constant dense<0.000000e+00> : vector<16xf32>
    %295 = vector.multi_reduction <add>, %294, %cst_87 [1] : vector<16x16xf32> to vector<16xf32>
    %296 = vector.shape_cast %295 : vector<16xf32> to vector<16x1xf32>
    %297 = tpu.reciprocal %296 : vector<16x1xf32> -> vector<16x1xf32>
    %298 = vector.broadcast %297 : vector<16x1xf32> to vector<16x16xf32>
    %299 = arith.mulf %294, %298 : vector<16x16xf32>
    %300 = vector.extract_strided_slice %278 {offsets = [0, 0], sizes = [16, 64], strides = [1, 1]} : vector<16x512xf32> to vector<16x64xf32>
    %cst_88 = arith.constant dense<0.000000e+00> : vector<16x64xf32>
    %301 = tpu.matmul %299, %300, %cst_88 {dimension_numbers = #tpu.dot_dimension_numbers<[1], [0], [0], [1], [0, 0, 1, 1], [], []>} : vector<16x16xf32>, vector<16x64xf32>, vector<16x64xf32> -> vector<16x64xf32>
    %302 = vector.extract_strided_slice %279 {offsets = [0, 1], sizes = [16, 1], strides = [1, 1]} : vector<16x8xf32> to vector<16x1xf32>
    %303 = vector.extract_strided_slice %280 {offsets = [1, 0], sizes = [1, 16], strides = [1, 1]} : vector<8x16xf32> to vector<1x16xf32>
    %304 = vector.broadcast %302 : vector<16x1xf32> to vector<16x16xf32>
    %305 = vector.broadcast %303 : vector<1x16xf32> to vector<16x16xf32>
    %306 = arith.addf %304, %305 : vector<16x16xf32>
    %cst_89 = arith.constant 2.000000e-01 : f32
    %307 = vector.broadcast %cst_89 : f32 to vector<16x16xf32>
    %308 = arith.mulf %307, %306 : vector<16x16xf32>
    %309 = arith.maximumf %306, %308 : vector<16x16xf32>
    %310 = arith.addf %309, %0 : vector<16x16xf32>
    %cst_90 = arith.constant dense<0xFF800000> : vector<16xf32>
    %311 = vector.multi_reduction <maximumf>, %310, %cst_90 [1] : vector<16x16xf32> to vector<16xf32>
    %312 = vector.shape_cast %311 : vector<16xf32> to vector<16x1xf32>
    %313 = vector.broadcast %312 : vector<16x1xf32> to vector<16x16xf32>
    %314 = arith.subf %310, %313 : vector<16x16xf32>
    %315 = math.exp %314 : vector<16x16xf32>
    %cst_91 = arith.constant dense<0.000000e+00> : vector<16xf32>
    %316 = vector.multi_reduction <add>, %315, %cst_91 [1] : vector<16x16xf32> to vector<16xf32>
    %317 = vector.shape_cast %316 : vector<16xf32> to vector<16x1xf32>
    %318 = tpu.reciprocal %317 : vector<16x1xf32> -> vector<16x1xf32>
    %319 = vector.broadcast %318 : vector<16x1xf32> to vector<16x16xf32>
    %320 = arith.mulf %315, %319 : vector<16x16xf32>
    %321 = vector.extract_strided_slice %278 {offsets = [0, 64], sizes = [16, 64], strides = [1, 1]} : vector<16x512xf32> to vector<16x64xf32>
    %cst_92 = arith.constant dense<0.000000e+00> : vector<16x64xf32>
    %322 = tpu.matmul %320, %321, %cst_92 {dimension_numbers = #tpu.dot_dimension_numbers<[1], [0], [0], [1], [0, 0, 1, 1], [], []>} : vector<16x16xf32>, vector<16x64xf32>, vector<16x64xf32> -> vector<16x64xf32>
    %323 = arith.addf %301, %322 : vector<16x64xf32>
    %324 = vector.extract_strided_slice %279 {offsets = [0, 2], sizes = [16, 1], strides = [1, 1]} : vector<16x8xf32> to vector<16x1xf32>
    %325 = vector.extract_strided_slice %280 {offsets = [2, 0], sizes = [1, 16], strides = [1, 1]} : vector<8x16xf32> to vector<1x16xf32>
    %326 = vector.broadcast %324 : vector<16x1xf32> to vector<16x16xf32>
    %327 = vector.broadcast %325 : vector<1x16xf32> to vector<16x16xf32>
    %328 = arith.addf %326, %327 : vector<16x16xf32>
    %cst_93 = arith.constant 2.000000e-01 : f32
    %329 = vector.broadcast %cst_93 : f32 to vector<16x16xf32>
    %330 = arith.mulf %329, %328 : vector<16x16xf32>
    %331 = arith.maximumf %328, %330 : vector<16x16xf32>
    %332 = arith.addf %331, %0 : vector<16x16xf32>
    %cst_94 = arith.constant dense<0xFF800000> : vector<16xf32>
    %333 = vector.multi_reduction <maximumf>, %332, %cst_94 [1] : vector<16x16xf32> to vector<16xf32>
    %334 = vector.shape_cast %333 : vector<16xf32> to vector<16x1xf32>
    %335 = vector.broadcast %334 : vector<16x1xf32> to vector<16x16xf32>
    %336 = arith.subf %332, %335 : vector<16x16xf32>
    %337 = math.exp %336 : vector<16x16xf32>
    %cst_95 = arith.constant dense<0.000000e+00> : vector<16xf32>
    %338 = vector.multi_reduction <add>, %337, %cst_95 [1] : vector<16x16xf32> to vector<16xf32>
    %339 = vector.shape_cast %338 : vector<16xf32> to vector<16x1xf32>
    %340 = tpu.reciprocal %339 : vector<16x1xf32> -> vector<16x1xf32>
    %341 = vector.broadcast %340 : vector<16x1xf32> to vector<16x16xf32>
    %342 = arith.mulf %337, %341 : vector<16x16xf32>
    %343 = vector.extract_strided_slice %278 {offsets = [0, 128], sizes = [16, 64], strides = [1, 1]} : vector<16x512xf32> to vector<16x64xf32>
    %cst_96 = arith.constant dense<0.000000e+00> : vector<16x64xf32>
    %344 = tpu.matmul %342, %343, %cst_96 {dimension_numbers = #tpu.dot_dimension_numbers<[1], [0], [0], [1], [0, 0, 1, 1], [], []>} : vector<16x16xf32>, vector<16x64xf32>, vector<16x64xf32> -> vector<16x64xf32>
    %345 = arith.addf %323, %344 : vector<16x64xf32>
    %346 = vector.extract_strided_slice %279 {offsets = [0, 3], sizes = [16, 1], strides = [1, 1]} : vector<16x8xf32> to vector<16x1xf32>
    %347 = vector.extract_strided_slice %280 {offsets = [3, 0], sizes = [1, 16], strides = [1, 1]} : vector<8x16xf32> to vector<1x16xf32>
    %348 = vector.broadcast %346 : vector<16x1xf32> to vector<16x16xf32>
    %349 = vector.broadcast %347 : vector<1x16xf32> to vector<16x16xf32>
    %350 = arith.addf %348, %349 : vector<16x16xf32>
    %cst_97 = arith.constant 2.000000e-01 : f32
    %351 = vector.broadcast %cst_97 : f32 to vector<16x16xf32>
    %352 = arith.mulf %351, %350 : vector<16x16xf32>
    %353 = arith.maximumf %350, %352 : vector<16x16xf32>
    %354 = arith.addf %353, %0 : vector<16x16xf32>
    %cst_98 = arith.constant dense<0xFF800000> : vector<16xf32>
    %355 = vector.multi_reduction <maximumf>, %354, %cst_98 [1] : vector<16x16xf32> to vector<16xf32>
    %356 = vector.shape_cast %355 : vector<16xf32> to vector<16x1xf32>
    %357 = vector.broadcast %356 : vector<16x1xf32> to vector<16x16xf32>
    %358 = arith.subf %354, %357 : vector<16x16xf32>
    %359 = math.exp %358 : vector<16x16xf32>
    %cst_99 = arith.constant dense<0.000000e+00> : vector<16xf32>
    %360 = vector.multi_reduction <add>, %359, %cst_99 [1] : vector<16x16xf32> to vector<16xf32>
    %361 = vector.shape_cast %360 : vector<16xf32> to vector<16x1xf32>
    %362 = tpu.reciprocal %361 : vector<16x1xf32> -> vector<16x1xf32>
    %363 = vector.broadcast %362 : vector<16x1xf32> to vector<16x16xf32>
    %364 = arith.mulf %359, %363 : vector<16x16xf32>
    %365 = vector.extract_strided_slice %278 {offsets = [0, 192], sizes = [16, 64], strides = [1, 1]} : vector<16x512xf32> to vector<16x64xf32>
    %cst_100 = arith.constant dense<0.000000e+00> : vector<16x64xf32>
    %366 = tpu.matmul %364, %365, %cst_100 {dimension_numbers = #tpu.dot_dimension_numbers<[1], [0], [0], [1], [0, 0, 1, 1], [], []>} : vector<16x16xf32>, vector<16x64xf32>, vector<16x64xf32> -> vector<16x64xf32>
    %367 = arith.addf %345, %366 : vector<16x64xf32>
    %368 = vector.extract_strided_slice %279 {offsets = [0, 4], sizes = [16, 1], strides = [1, 1]} : vector<16x8xf32> to vector<16x1xf32>
    %369 = vector.extract_strided_slice %280 {offsets = [4, 0], sizes = [1, 16], strides = [1, 1]} : vector<8x16xf32> to vector<1x16xf32>
    %370 = vector.broadcast %368 : vector<16x1xf32> to vector<16x16xf32>
    %371 = vector.broadcast %369 : vector<1x16xf32> to vector<16x16xf32>
    %372 = arith.addf %370, %371 : vector<16x16xf32>
    %cst_101 = arith.constant 2.000000e-01 : f32
    %373 = vector.broadcast %cst_101 : f32 to vector<16x16xf32>
    %374 = arith.mulf %373, %372 : vector<16x16xf32>
    %375 = arith.maximumf %372, %374 : vector<16x16xf32>
    %376 = arith.addf %375, %0 : vector<16x16xf32>
    %cst_102 = arith.constant dense<0xFF800000> : vector<16xf32>
    %377 = vector.multi_reduction <maximumf>, %376, %cst_102 [1] : vector<16x16xf32> to vector<16xf32>
    %378 = vector.shape_cast %377 : vector<16xf32> to vector<16x1xf32>
    %379 = vector.broadcast %378 : vector<16x1xf32> to vector<16x16xf32>
    %380 = arith.subf %376, %379 : vector<16x16xf32>
    %381 = math.exp %380 : vector<16x16xf32>
    %cst_103 = arith.constant dense<0.000000e+00> : vector<16xf32>
    %382 = vector.multi_reduction <add>, %381, %cst_103 [1] : vector<16x16xf32> to vector<16xf32>
    %383 = vector.shape_cast %382 : vector<16xf32> to vector<16x1xf32>
    %384 = tpu.reciprocal %383 : vector<16x1xf32> -> vector<16x1xf32>
    %385 = vector.broadcast %384 : vector<16x1xf32> to vector<16x16xf32>
    %386 = arith.mulf %381, %385 : vector<16x16xf32>
    %387 = vector.extract_strided_slice %278 {offsets = [0, 256], sizes = [16, 64], strides = [1, 1]} : vector<16x512xf32> to vector<16x64xf32>
    %cst_104 = arith.constant dense<0.000000e+00> : vector<16x64xf32>
    %388 = tpu.matmul %386, %387, %cst_104 {dimension_numbers = #tpu.dot_dimension_numbers<[1], [0], [0], [1], [0, 0, 1, 1], [], []>} : vector<16x16xf32>, vector<16x64xf32>, vector<16x64xf32> -> vector<16x64xf32>
    %389 = arith.addf %367, %388 : vector<16x64xf32>
    %390 = vector.extract_strided_slice %279 {offsets = [0, 5], sizes = [16, 1], strides = [1, 1]} : vector<16x8xf32> to vector<16x1xf32>
    %391 = vector.extract_strided_slice %280 {offsets = [5, 0], sizes = [1, 16], strides = [1, 1]} : vector<8x16xf32> to vector<1x16xf32>
    %392 = vector.broadcast %390 : vector<16x1xf32> to vector<16x16xf32>
    %393 = vector.broadcast %391 : vector<1x16xf32> to vector<16x16xf32>
    %394 = arith.addf %392, %393 : vector<16x16xf32>
    %cst_105 = arith.constant 2.000000e-01 : f32
    %395 = vector.broadcast %cst_105 : f32 to vector<16x16xf32>
    %396 = arith.mulf %395, %394 : vector<16x16xf32>
    %397 = arith.maximumf %394, %396 : vector<16x16xf32>
    %398 = arith.addf %397, %0 : vector<16x16xf32>
    %cst_106 = arith.constant dense<0xFF800000> : vector<16xf32>
    %399 = vector.multi_reduction <maximumf>, %398, %cst_106 [1] : vector<16x16xf32> to vector<16xf32>
    %400 = vector.shape_cast %399 : vector<16xf32> to vector<16x1xf32>
    %401 = vector.broadcast %400 : vector<16x1xf32> to vector<16x16xf32>
    %402 = arith.subf %398, %401 : vector<16x16xf32>
    %403 = math.exp %402 : vector<16x16xf32>
    %cst_107 = arith.constant dense<0.000000e+00> : vector<16xf32>
    %404 = vector.multi_reduction <add>, %403, %cst_107 [1] : vector<16x16xf32> to vector<16xf32>
    %405 = vector.shape_cast %404 : vector<16xf32> to vector<16x1xf32>
    %406 = tpu.reciprocal %405 : vector<16x1xf32> -> vector<16x1xf32>
    %407 = vector.broadcast %406 : vector<16x1xf32> to vector<16x16xf32>
    %408 = arith.mulf %403, %407 : vector<16x16xf32>
    %409 = vector.extract_strided_slice %278 {offsets = [0, 320], sizes = [16, 64], strides = [1, 1]} : vector<16x512xf32> to vector<16x64xf32>
    %cst_108 = arith.constant dense<0.000000e+00> : vector<16x64xf32>
    %410 = tpu.matmul %408, %409, %cst_108 {dimension_numbers = #tpu.dot_dimension_numbers<[1], [0], [0], [1], [0, 0, 1, 1], [], []>} : vector<16x16xf32>, vector<16x64xf32>, vector<16x64xf32> -> vector<16x64xf32>
    %411 = arith.addf %389, %410 : vector<16x64xf32>
    %412 = vector.extract_strided_slice %279 {offsets = [0, 6], sizes = [16, 1], strides = [1, 1]} : vector<16x8xf32> to vector<16x1xf32>
    %413 = vector.extract_strided_slice %280 {offsets = [6, 0], sizes = [1, 16], strides = [1, 1]} : vector<8x16xf32> to vector<1x16xf32>
    %414 = vector.broadcast %412 : vector<16x1xf32> to vector<16x16xf32>
    %415 = vector.broadcast %413 : vector<1x16xf32> to vector<16x16xf32>
    %416 = arith.addf %414, %415 : vector<16x16xf32>
    %cst_109 = arith.constant 2.000000e-01 : f32
    %417 = vector.broadcast %cst_109 : f32 to vector<16x16xf32>
    %418 = arith.mulf %417, %416 : vector<16x16xf32>
    %419 = arith.maximumf %416, %418 : vector<16x16xf32>
    %420 = arith.addf %419, %0 : vector<16x16xf32>
    %cst_110 = arith.constant dense<0xFF800000> : vector<16xf32>
    %421 = vector.multi_reduction <maximumf>, %420, %cst_110 [1] : vector<16x16xf32> to vector<16xf32>
    %422 = vector.shape_cast %421 : vector<16xf32> to vector<16x1xf32>
    %423 = vector.broadcast %422 : vector<16x1xf32> to vector<16x16xf32>
    %424 = arith.subf %420, %423 : vector<16x16xf32>
    %425 = math.exp %424 : vector<16x16xf32>
    %cst_111 = arith.constant dense<0.000000e+00> : vector<16xf32>
    %426 = vector.multi_reduction <add>, %425, %cst_111 [1] : vector<16x16xf32> to vector<16xf32>
    %427 = vector.shape_cast %426 : vector<16xf32> to vector<16x1xf32>
    %428 = tpu.reciprocal %427 : vector<16x1xf32> -> vector<16x1xf32>
    %429 = vector.broadcast %428 : vector<16x1xf32> to vector<16x16xf32>
    %430 = arith.mulf %425, %429 : vector<16x16xf32>
    %431 = vector.extract_strided_slice %278 {offsets = [0, 384], sizes = [16, 64], strides = [1, 1]} : vector<16x512xf32> to vector<16x64xf32>
    %cst_112 = arith.constant dense<0.000000e+00> : vector<16x64xf32>
    %432 = tpu.matmul %430, %431, %cst_112 {dimension_numbers = #tpu.dot_dimension_numbers<[1], [0], [0], [1], [0, 0, 1, 1], [], []>} : vector<16x16xf32>, vector<16x64xf32>, vector<16x64xf32> -> vector<16x64xf32>
    %433 = arith.addf %411, %432 : vector<16x64xf32>
    %434 = vector.extract_strided_slice %279 {offsets = [0, 7], sizes = [16, 1], strides = [1, 1]} : vector<16x8xf32> to vector<16x1xf32>
    %435 = vector.extract_strided_slice %280 {offsets = [7, 0], sizes = [1, 16], strides = [1, 1]} : vector<8x16xf32> to vector<1x16xf32>
    %436 = vector.broadcast %434 : vector<16x1xf32> to vector<16x16xf32>
    %437 = vector.broadcast %435 : vector<1x16xf32> to vector<16x16xf32>
    %438 = arith.addf %436, %437 : vector<16x16xf32>
    %cst_113 = arith.constant 2.000000e-01 : f32
    %439 = vector.broadcast %cst_113 : f32 to vector<16x16xf32>
    %440 = arith.mulf %439, %438 : vector<16x16xf32>
    %441 = arith.maximumf %438, %440 : vector<16x16xf32>
    %442 = arith.addf %441, %0 : vector<16x16xf32>
    %cst_114 = arith.constant dense<0xFF800000> : vector<16xf32>
    %443 = vector.multi_reduction <maximumf>, %442, %cst_114 [1] : vector<16x16xf32> to vector<16xf32>
    %444 = vector.shape_cast %443 : vector<16xf32> to vector<16x1xf32>
    %445 = vector.broadcast %444 : vector<16x1xf32> to vector<16x16xf32>
    %446 = arith.subf %442, %445 : vector<16x16xf32>
    %447 = math.exp %446 : vector<16x16xf32>
    %cst_115 = arith.constant dense<0.000000e+00> : vector<16xf32>
    %448 = vector.multi_reduction <add>, %447, %cst_115 [1] : vector<16x16xf32> to vector<16xf32>
    %449 = vector.shape_cast %448 : vector<16xf32> to vector<16x1xf32>
    %450 = tpu.reciprocal %449 : vector<16x1xf32> -> vector<16x1xf32>
    %451 = vector.broadcast %450 : vector<16x1xf32> to vector<16x16xf32>
    %452 = arith.mulf %447, %451 : vector<16x16xf32>
    %453 = vector.extract_strided_slice %278 {offsets = [0, 448], sizes = [16, 64], strides = [1, 1]} : vector<16x512xf32> to vector<16x64xf32>
    %cst_116 = arith.constant dense<0.000000e+00> : vector<16x64xf32>
    %454 = tpu.matmul %452, %453, %cst_116 {dimension_numbers = #tpu.dot_dimension_numbers<[1], [0], [0], [1], [0, 0, 1, 1], [], []>} : vector<16x16xf32>, vector<16x64xf32>, vector<16x64xf32> -> vector<16x64xf32>
    %455 = arith.addf %433, %454 : vector<16x64xf32>
    %cst_117 = arith.constant 1.250000e-01 : f32
    %456 = vector.broadcast %cst_117 : f32 to vector<16x64xf32>
    %457 = arith.mulf %455, %456 : vector<16x64xf32>
    %458 = vector.broadcast %276 : vector<1x64xf32> to vector<16x64xf32>
    %459 = arith.addf %457, %458 : vector<16x64xf32>
    %c0_118 = arith.constant 0 : index
    %c0_119 = arith.constant 0 : index
    %460 = vector.load %arg8[%c0_118, %c0_119] : memref<64x5xf32, #tpu.memory_space<vmem>>, vector<64x5xf32>
    %c0_120 = arith.constant 0 : index
    %c0_121 = arith.constant 0 : index
    %461 = vector.load %arg9[%c0_120, %c0_121] : memref<1x64xf32, #tpu.memory_space<vmem>>, vector<1x64xf32>
    %c0_122 = arith.constant 0 : index
    %c0_123 = arith.constant 0 : index
    %462 = vector.load %arg10[%c0_122, %c0_123] : memref<1x4xf32, #tpu.memory_space<vmem>>, vector<1x4xf32>
    %cst_124 = arith.constant dense<0.000000e+00> : vector<16x5xf32>
    %463 = tpu.matmul %459, %460, %cst_124 {dimension_numbers = #tpu.dot_dimension_numbers<[1], [0], [0], [1], [0, 0, 1, 1], [], []>} : vector<16x64xf32>, vector<64x5xf32>, vector<16x5xf32> -> vector<16x5xf32>
    %464 = vector.extract_strided_slice %463 {offsets = [0, 0], sizes = [16, 4], strides = [1, 1]} : vector<16x5xf32> to vector<16x4xf32>
    %465 = vector.extract_strided_slice %463 {offsets = [0, 4], sizes = [16, 1], strides = [1, 1]} : vector<16x5xf32> to vector<16x1xf32>
    %cst_125 = arith.constant dense<0.000000e+00> : vector<1x16xf32>
    %466 = tpu.matmul %461, %459, %cst_125 {dimension_numbers = #tpu.dot_dimension_numbers<[1], [1], [0], [0], [0, 0, 1, 0], [], []>} : vector<1x64xf32>, vector<16x64xf32>, vector<1x16xf32> -> vector<1x16xf32>
    %467 = vector.broadcast %465 : vector<16x1xf32> to vector<16x16xf32>
    %468 = vector.broadcast %466 : vector<1x16xf32> to vector<16x16xf32>
    %469 = arith.addf %467, %468 : vector<16x16xf32>
    %cst_126 = arith.constant 2.000000e-01 : f32
    %470 = vector.broadcast %cst_126 : f32 to vector<16x16xf32>
    %471 = arith.mulf %470, %469 : vector<16x16xf32>
    %472 = arith.maximumf %469, %471 : vector<16x16xf32>
    %473 = arith.addf %472, %0 : vector<16x16xf32>
    %cst_127 = arith.constant dense<0xFF800000> : vector<16xf32>
    %474 = vector.multi_reduction <maximumf>, %473, %cst_127 [1] : vector<16x16xf32> to vector<16xf32>
    %475 = vector.shape_cast %474 : vector<16xf32> to vector<16x1xf32>
    %476 = vector.broadcast %475 : vector<16x1xf32> to vector<16x16xf32>
    %477 = arith.subf %473, %476 : vector<16x16xf32>
    %478 = math.exp %477 : vector<16x16xf32>
    %cst_128 = arith.constant dense<0.000000e+00> : vector<16xf32>
    %479 = vector.multi_reduction <add>, %478, %cst_128 [1] : vector<16x16xf32> to vector<16xf32>
    %480 = vector.shape_cast %479 : vector<16xf32> to vector<16x1xf32>
    %481 = tpu.reciprocal %480 : vector<16x1xf32> -> vector<16x1xf32>
    %482 = vector.broadcast %481 : vector<16x1xf32> to vector<16x16xf32>
    %483 = arith.mulf %478, %482 : vector<16x16xf32>
    %cst_129 = arith.constant dense<0.000000e+00> : vector<16x4xf32>
    %484 = tpu.matmul %483, %464, %cst_129 {dimension_numbers = #tpu.dot_dimension_numbers<[1], [0], [0], [1], [0, 0, 1, 1], [], []>} : vector<16x16xf32>, vector<16x4xf32>, vector<16x4xf32> -> vector<16x4xf32>
    %cst_130 = arith.constant 1.000000e+00 : f32
    %485 = vector.broadcast %cst_130 : f32 to vector<16x4xf32>
    %486 = arith.mulf %484, %485 : vector<16x4xf32>
    %487 = vector.broadcast %462 : vector<1x4xf32> to vector<16x4xf32>
    %488 = arith.addf %486, %487 : vector<16x4xf32>
    %cst_131 = arith.constant dense<0xFF800000> : vector<16xf32>
    %489 = vector.multi_reduction <maximumf>, %488, %cst_131 [1] : vector<16x4xf32> to vector<16xf32>
    %490 = vector.shape_cast %489 : vector<16xf32> to vector<16x1xf32>
    %491 = vector.broadcast %490 : vector<16x1xf32> to vector<16x4xf32>
    %492 = arith.subf %488, %491 : vector<16x4xf32>
    %493 = math.exp %492 : vector<16x4xf32>
    %cst_132 = arith.constant dense<0.000000e+00> : vector<16xf32>
    %494 = vector.multi_reduction <add>, %493, %cst_132 [1] : vector<16x4xf32> to vector<16xf32>
    %495 = vector.shape_cast %494 : vector<16xf32> to vector<16x1xf32>
    %496 = math.log %495 : vector<16x1xf32>
    %497 = arith.addf %496, %490 : vector<16x1xf32>
    %498 = vector.broadcast %497 : vector<16x1xf32> to vector<16x4xf32>
    %499 = arith.subf %488, %498 : vector<16x4xf32>
    %c0_133 = arith.constant 0 : index
    %c0_134 = arith.constant 0 : index
    %500 = vector.load %arg11[%c0_133, %c0_134] : memref<16x4xf32, #tpu.memory_space<vmem>>, vector<16x4xf32>
    tpu.vector_store %arg11[%c0_133, %c0_134], %499 {strides = array<i32>} : memref<16x4xf32, #tpu.memory_space<vmem>>, vector<16x4xf32>,
    return
  }
}

</mosaic_0001>

<bundles_post_ra>
// kernel: tpu_custom_call.1
= control target key start
LH: loop header
LB: loop body
LE: loop exit
PB: predicated region body
PF: predicated region fallthrough
CT: control target
= control target key end

     0   :  { %16 = vsyncpa [#allocation4], 0  ;;  %s4005_s17 = smov [#allocation3]   ;;  %s4910_s0 = inlined_call_operand.vmem [shape: f32[16,8], index: 0, kind: input, shape index: {}]   ;;  %s4911_s1 = inlined_call_operand.vmem [shape: f32[16,16], index: 1, kind: input, shape index: {}]   ;;  %s4912_s2 = inlined_call_operand.vmem [shape: f32[8,72], index: 2, kind: input, shape index: {}]   ;;  %s4913_s3 = inlined_call_operand.vmem [shape: f32[8,8], index: 3, kind: input, shape index: {}]   ;;  %s4914_s4 = inlined_call_operand.vmem [shape: f32[1,64], index: 4, kind: input, shape index: {}]   ;;  %s4915_s5 = inlined_call_operand.hbm [shape: f32[64,520], index: 5, kind: input, shape index: {}]   ;;  %s4916_s6 = inlined_call_operand.vmem [shape: f32[8,64], index: 6, kind: input, shape index: {}]   ;;  %s4917_s7 = inlined_call_operand.vmem [shape: f32[1,64], index: 7, kind: input, shape index: {}]   ;;  %s4918_s8 = inlined_call_operand.vmem [shape: f32[64,5], index: 8, kind: input, shape index: {}]   ;;  %s4919_s9 = inlined_call_operand.vmem [shape: f32[1,64], index: 9, kind: input, shape index: {}]   ;;  %s4920_s10 = inlined_call_operand.vmem [shape: f32[1,4], index: 10, kind: input, shape index: {}]   ;;  %s4921_s11 = inlined_call_operand.vmem [shape: f32[16,4], index: 11, kind: output, shape index: {}]  }
   0x1   :  { %s32_s18 = sshll.u32 %s4005_s17, 4  ;;  %s3981_s21 = scalar_lea.hbm %s4915_s5, 5120  ;;  %s33_s18 = int_to_ptr.vmem [resolvable:$true] %s32_s18 }
   0x2   :  { %p3982_p0 = scmp.ne.s32.totalorder %s4915_s5, %s3981_s21  ;;  %p3985_p1 = scmp.lt.u32.totalorder %s3981_s21, %s4915_s5 }
   0x4   :  { %p3987_p2 = pnand %p3985_p1, %p3982_p0 }
   0x6   :  { %3990 = shalt.err (!%p3987_p2)
}
   0x7   :  { %s3991_s26 = scalar_lea.vmem %s33_s18, 5120  ;;  %p3996_p4 = scmp.lt.s32.totalorder %s33_s18, %s33_s18 }
   0x8   :  { %p3992_p3 = scmp.ne.s32.totalorder %s33_s18, %s3991_s26  ;;  %p3997_p5 = scmp.lt.s32.totalorder %s3991_s26, %s3991_s26 }
   0xa   :  { %p3998_p6 = por %p3997_p5, %p3996_p4 }
   0xc   :  { %p3999_p7 = pnand %p3998_p6, %p3992_p3 }
   0xe   :  { %4002 = shalt.err (!%p3999_p7)
}
   0xf   :  { %s4006_s27 = smov 640   ;;  %s4007_s28 = smov 40  }
  0x10   :  { %38 = dma.hbm_to_vmem [thread:$0]  %s4915_s5, 5120, %s33_s18, [#allocation4], %s4006_s27, %s4006_s27, %s4007_s28  }
  0x11   :  { %4003 = dma.done.wait [#allocation4], 5120  }
  0x12   :  { %4004 = vsyncadd [#allocation4], 4294962176  ;;  %v4008_v0 = vmov 0.0|0.0   ;;  %vm4009_vm0 = vmmov 0   ;;  %v4010_v1 = vmov 0.0   ;;  %v4011_v2 = vmov 65  }
  0x13   :  { %3522 = vmatprep.subr.bf16.mxu1 %v4008_v0  ;;  %3348 = vmatprep.mubr.msk.f32.mxu1 %vm4009_vm0, %v4010_v1  ;;  %v4012_v3 = vmov 64   ;;  %vm59_vm1 = vcmask 64512   ;;  %v56_v4 = vld [vmem:[%s4912_s2] sm:$0xff]  ;;  %v55_v6 = vld [vmem:[%s4910_s0 + $0x8] sm:$0xff]  ;;  %v4013_v13 = vmov 66   ;;  %v4014_v14 = vmov 67  }
  0x14   :  { %3717 = vset.pattern.permute.xlu1 %v4011_v2  ;;  %3716 = vset.pattern.permute.xlu0 %v4012_v3  ;;  %vm3524_vm2 = vmpackc.low %vm59_vm1, %vm59_vm1  ;;  %v54_v5 = vld [vmem:[%s4910_s0] sm:$0xff]  ;;  %v4015_v17 = vmov 68   ;;  %v4016_v18 = vmov 70   ;;  %v4017_v19 = vmov 69   ;;  %v4018_v20 = vmov 71   ;;  %v4162_v36 = vld [vmem:[%s4911_s1 + $0x8] sm:$0xff] }
  0x15   :  { %3339 = vmatprep.subr.mxu0 %v56_v4  ;;  %3341 = vmatprep.mubr.msk.f32.mxu0 %vm59_vm1, %v54_v5  ;;  %v3523_v7 = vpack.c.bf16 %v55_v6, %v54_v5  ;;  %v57_v8 = vld [vmem:[%s4913_s3] sm:$0xff]  ;;  %v224_v21 = vlaneseq  ;;  %vm236_vm3 = vcmask 130048   ;;  %s4019_s20 = smov 120   ;;  %s4020_s21 = smov 104  }
  0x16   :  { %3340 = vmatpush3.msra.mxu0 %v56_v4  ;;  %s4021_s22 = smov 112   ;;  %s4022_s23 = smov 88  }
  0x17   :  { %3342 = vmatmul.mubr.msk.f32.vlgmr.msra.gmra.mrb[0].mxu0 %vm59_vm1, %v55_v6  ;;  %3525 = vmatpush3.bf16.xpose.msk.msra.mxu1 %vm3524_vm2, %v3523_v7  ;;  %v4138_v22 = vshrl.u32 %v224_v21, 7  ;;  %v4221_v21 = vld [vmem:[%s4911_s1] sm:$0xff]  ;;  %s4023_s24 = smov 96   ;;  %s4024_s25 = smov 72  }
  0x18   :  { %s4025_s26 = smov 80   ;;  %s4027_s30 = smov 16  }
  0x19   :  { %v370_v23 = vsub.s32 1, %v4138_v22  ;;  %v4142_v24 = vsub.s32 0, %v4138_v22  ;;  %v525_v29 = vsub.s32 2, %v4138_v22  ;;  %v680_v32 = vsub.s32 3, %v4138_v22  ;;  %s4028_s12 = smov 24   ;;  %s4029_s5 = smov 32  }
  0x1a   :  { %v835_v41 = vsub.s32 4, %v4138_v22  ;;  %v990_v54 = vsub.s32 5, %v4138_v22  ;;  %s4030_s13 = smov 48   ;;  %s4031_s14 = smov 56  }
  0x1e   :  { %3349 = vmatmul.mubr.msk.f32.vlgmr.msra.gmra.mrb[0].mxu1 %vm59_vm1, %v57_v8 }
  0xea   :  { %v3343_v9 = vpop.f32.mrb[0].mxu0 }
  0xeb   :  { %365 = vperm.xlu1 %3717, %v3343_v9   ;;  %221 = vperm.xlu0 %3716, %v3343_v9   ;;  %v132_v10 = vpop.f32.mrb[1].mxu0 }
  0xec   :  { %v3526_v11 = vpack.c.bf16 %v3343_v9, %v132_v10  ;;  %v4134_v12 = vpack.i.bf16 %v3343_v9, %v132_v10 }
  0xee   :  { %3527 = vmatprep.subr.bf16.mxu0 %v3526_v11 }
  0xef   :  { %3718 = vset.pattern.permute.xlu1 %v4013_v13  ;;  %3719 = vset.pattern.permute.xlu0 %v4014_v14 }
  0xf0   :  { %3529 = vmatpush3.bf16.msra.mxu0 %v3526_v11  ;;  %520 = vperm.xlu1 %3718, %v3343_v9  }
  0xf1   :  { %675 = vperm.xlu0 %3719, %v3343_v9   ;;  %v4136_v15 = vpop.f32.mrb[0].mxu1 }
  0xf2   :  { %v3350_v16 = vpop.f32.mrb[1].mxu1  ;;  %v4147_v25 = vrot.slane %v4136_v15, %v370_v23  ;;  %v227_v26 = vrot.slane %v4136_v15, %v4142_v24  ;;  %v4157_v35 = vrot.slane %v4136_v15, %v525_v29  ;;  %v4167_v40 = vrot.slane %v4136_v15, %v680_v32 }
  0xf3   :  { %v4181_v49 = vrot.slane %v4136_v15, %v835_v41  ;;  %v4195_v60 = vrot.slane %v4136_v15, %v990_v54 }
  0xf4   :  { %3720 = vset.pattern.permute.xlu1 %v4015_v17 }
  0xf5   :  { %3722 = vset.pattern.permute.xlu0 %v4016_v18  ;;  %830 = vperm.xlu1 %3720, %v3343_v9  }
  0xf6   :  { %1140 = vperm.xlu0 %3722, %v3343_v9  }
  0xf9   :  { %3721 = vset.pattern.permute.xlu1 %v4017_v19 }
  0xfa   :  { %3724 = vset.pattern.permute.xlu0 %v4012_v3  ;;  %985 = vperm.xlu1 %3721, %v3343_v9  }
  0xfb   :  { %216 = vperm.xlu0 %3724, %v132_v10  }
  0xfe   :  { %3723 = vset.pattern.permute.xlu1 %v4018_v20 }
  0xff   :  { %3726 = vset.pattern.permute.xlu0 %v4013_v13  ;;  %1295 = vperm.xlu1 %3723, %v3343_v9  }
 0x100   :  { %516 = vperm.xlu0 %3726, %v132_v10  }
 0x103   :  { %3725 = vset.pattern.permute.xlu1 %v4011_v2  ;;  %v1145_v2 = vsub.s32 6, %v4138_v22 }
 0x104   :  { %3729 = vset.pattern.permute.xlu0 %v4017_v19  ;;  %361 = vperm.xlu1 %3725, %v132_v10  }
 0x105   :  { %981 = vperm.xlu0 %3729, %v132_v10  }
 0x108   :  { %3727 = vset.pattern.permute.xlu1 %v4014_v14  ;;  %v1300_v14 = vsub.s32 7, %v4138_v22 }
 0x109   :  { %671 = vperm.xlu1 %3727, %v132_v10  }
 0x10d   :  { %3728 = vset.pattern.permute.xlu1 %v4015_v17 }
 0x10e   :  { %826 = vperm.xlu1 %3728, %v132_v10  }
 0x112   :  { %3730 = vset.pattern.permute.xlu1 %v4016_v18 }
 0x113   :  { %1136 = vperm.xlu1 %3730, %v132_v10  }
 0x117   :  { %3731 = vset.pattern.permute.xlu1 %v4018_v20 }
 0x118   :  { %1291 = vperm.xlu1 %3731, %v132_v10   ;;  %v1146_v10 = vrot.slane %v4136_v15, %v1145_v2 }
 0x16a   :  { %v366_v27 = vpop.permute.xlu1 %365  ;;  %v222_v28 = vpop.permute.xlu0 %221 }
 0x16b   :  { %v373_v30 = vadd.f32 %v4147_v25, %v366_v27  ;;  %v229_v31 = vadd.f32 %v227_v26, %v222_v28 }
 0x16d   :  { %v375_v33 = vmul.f32 0.2, %v373_v30  ;;  %v231_v34 = vmul.f32 0.2, %v229_v31 }
 0x16f   :  { %v377_v37 = vmax.f32 %v373_v30, %v375_v33  ;;  %v233_v38 = vmax.f32 %v229_v31, %v231_v34  ;;  %v521_v39 = vpop.permute.xlu1 %520 }
 0x170   :  { %v528_v42 = vadd.f32 %v4157_v35, %v521_v39  ;;  %v676_v43 = vpop.permute.xlu0 %675 }
 0x171   :  { %v683_v44 = vadd.f32 %v4167_v40, %v676_v43  ;;  %v4173_v45 = vadd.f32 %v377_v37, %v4162_v36  ;;  %v4176_v46 = vadd.f32 %v233_v38, %v4162_v36 }
 0x172   :  { %v530_v47 = vmul.f32 0.2, %v528_v42 }
 0x173   :  { %v685_v48 = vmul.f32 0.2, %v683_v44  ;;  %v383_v50 = vsel %vm236_vm3, %v4173_v45, -inf  ;;  %v240_v51 = vsel %vm236_vm3, %v4176_v46, -inf }
 0x174   :  { %v532_v52 = vmax.f32 %v528_v42, %v530_v47  ;;  %v831_v53 = vpop.permute.xlu1 %830  ;;  %384 = vmax.xlane.f32.xlu0 %v383_v50  ;;  %241 = vmax.xlane.f32.xlu1 %v240_v51 }
 0x175   :  { %v687_v55 = vmax.f32 %v683_v44, %v685_v48  ;;  %v838_v56 = vadd.f32 %v4181_v49, %v831_v53  ;;  %v1141_v57 = vpop.permute.xlu0 %1140 }
 0x176   :  { %v4190_v58 = vadd.f32 %v532_v52, %v4162_v36  ;;  %v1148_v17 = vadd.f32 %v1146_v10, %v1141_v57 }
 0x177   :  { %v840_v59 = vmul.f32 0.2, %v838_v56  ;;  %v4200_v62 = vadd.f32 %v687_v55, %v4162_v36 }
 0x178   :  { %v538_v61 = vsel %vm236_vm3, %v4190_v58, -inf  ;;  %v1150_v27 = vmul.f32 0.2, %v1148_v17 }
 0x179   :  { %v842_v63 = vmax.f32 %v838_v56, %v840_v59  ;;  %v986_v3 = vpop.permute.xlu1 %985  ;;  %539 = vmax.xlane.f32.xlu0 %v538_v61  ;;  %v693_v8 = vsel %vm236_vm3, %v4200_v62, -inf }
 0x17a   :  { %v993_v4 = vadd.f32 %v4195_v60, %v986_v3  ;;  %v217_v5 = vpop.permute.xlu0 %216  ;;  %v1152_v38 = vmax.f32 %v1148_v17, %v1150_v27 }
 0x17b   :  { %v228_v6 = vadd.f32 %v227_v26, %v217_v5  ;;  %v4207_v9 = vadd.f32 %v842_v63, %v4162_v36  ;;  %v1301_v26 = vrot.slane %v4136_v15, %v1300_v14 }
 0x17c   :  { %v995_v7 = vmul.f32 0.2, %v993_v4  ;;  %v4244_v47 = vadd.f32 %v1152_v38, %v4162_v36 }
 0x17d   :  { %v230_v11 = vmul.f32 0.2, %v228_v6  ;;  %694 = vmax.xlane.f32.xlu0 %v693_v8  ;;  %v848_v19 = vsel %vm236_vm3, %v4207_v9, -inf }
 0x17e   :  { %v997_v13 = vmax.f32 %v993_v4, %v995_v7  ;;  %v1296_v16 = vpop.permute.xlu1 %1295  ;;  %v1158_v48 = vsel %vm236_vm3, %v4244_v47, -inf }
 0x17f   :  { %v232_v18 = vmax.f32 %v228_v6, %v230_v11  ;;  %v1303_v30 = vadd.f32 %v1301_v26, %v1296_v16  ;;  %v517_v52 = vpop.permute.xlu0 %516 }
 0x180   :  { %v4216_v20 = vadd.f32 %v997_v13, %v4162_v36  ;;  %v527_v55 = vadd.f32 %v4157_v35, %v517_v52 }
 0x181   :  { %849 = vmax.xlane.f32.xlu0 %v848_v19  ;;  %v4230_v34 = vadd.f32 %v232_v18, %v4221_v21  ;;  %v1305_v39 = vmul.f32 0.2, %v1303_v30 }
 0x182   :  { %v1003_v33 = vsel %vm236_vm3, %v4216_v20, -inf  ;;  %v529_v56 = vmul.f32 0.2, %v527_v55 }
 0x183   :  { %v362_v28 = vpop.permute.xlu1 %361  ;;  %v237_v42 = vsel %vm236_vm3, %v4230_v34, -inf  ;;  %v1307_v43 = vmax.f32 %v1303_v30, %v1305_v39 }
 0x184   :  { %v372_v31 = vadd.f32 %v4147_v25, %v362_v28  ;;  %v531_v61 = vmax.f32 %v527_v55, %v529_v56  ;;  %v982_v63 = vpop.permute.xlu0 %981 }
 0x185   :  { %1004 = vmax.xlane.f32.xlu0 %v1003_v33  ;;  %3733 = vrot.lane.b32.xlu1 %v4134_v12, %s4019_s20  ;;  %v4249_v50 = vadd.f32 %v1307_v43, %v4162_v36  ;;  %v992_v36 = vadd.f32 %v4195_v60, %v982_v63 }
 0x186   :  { %v374_v37 = vmul.f32 0.2, %v372_v31  ;;  %v4258_v8 = vadd.f32 %v531_v61, %v4221_v21 }
 0x187   :  { %v1313_v51 = vsel %vm236_vm3, %v4249_v50, -inf  ;;  %v994_v11 = vmul.f32 0.2, %v992_v36 }
 0x188   :  { %v376_v15 = vmax.f32 %v372_v31, %v374_v37  ;;  %v672_v53 = vpop.permute.xlu1 %671  ;;  %v535_v13 = vsel %vm236_vm3, %v4258_v8, -inf }
 0x189   :  { %3743 = vrot.lane.b32.xlu1 %v4134_v12, %s4020_s21  ;;  %238 = vmax.xlane.f32.xlu0 %v237_v42  ;;  %v682_v57 = vadd.f32 %v4167_v40, %v672_v53  ;;  %v996_v16 = vmax.f32 %v992_v36, %v994_v11 }
 0x18a   :  { %v4239_v25 = vadd.f32 %v376_v15, %v4221_v21 }
 0x18b   :  { %v684_v3 = vmul.f32 0.2, %v682_v57  ;;  %v4277_v31 = vadd.f32 %v996_v16, %v4221_v21 }
 0x18c   :  { %v380_v44 = vsel %vm236_vm3, %v4239_v25, -inf }
 0x18d   :  { %381 = vmax.xlane.f32.xlu0 %v380_v44  ;;  %v827_v59 = vpop.permute.xlu1 %826  ;;  %v686_v6 = vmax.f32 %v682_v57, %v684_v3 }
 0x18e   :  { %v837_v4 = vadd.f32 %v4181_v49, %v827_v59 }
 0x18f   :  { %v4265_v49 = vadd.f32 %v686_v6, %v4221_v21 }
 0x190   :  { %v839_v7 = vmul.f32 0.2, %v837_v4 }
 0x191   :  { %1159 = vmax.xlane.f32.xlu0 %v1158_v48  ;;  %v690_v19 = vsel %vm236_vm3, %v4265_v49, -inf }
 0x192   :  { %v1137_v5 = vpop.permute.xlu1 %1136  ;;  %v841_v35 = vmax.f32 %v837_v4, %v839_v7 }
 0x193   :  { %v1147_v40 = vadd.f32 %v1146_v10, %v1137_v5 }
 0x194   :  { %v4272_v10 = vadd.f32 %v841_v35, %v4221_v21 }
 0x195   :  { %1314 = vmax.xlane.f32.xlu0 %v1313_v51  ;;  %v1149_v17 = vmul.f32 0.2, %v1147_v40 }
 0x196   :  { %v845_v30 = vsel %vm236_vm3, %v4272_v10, -inf }
 0x197   :  { %v1292_v60 = vpop.permute.xlu1 %1291  ;;  %v1151_v27 = vmax.f32 %v1147_v40, %v1149_v17 }
 0x198   :  { %v1302_v18 = vadd.f32 %v1301_v26, %v1292_v60  ;;  %v1000_v26 = vsel %vm236_vm3, %v4277_v31, -inf }
 0x199   :  { %v4282_v37 = vadd.f32 %v1151_v27, %v4221_v21 }
 0x19a   :  { %v1304_v28 = vmul.f32 0.2, %v1302_v18 }
 0x19b   :  { %v1155_v38 = vsel %vm236_vm3, %v4282_v37, -inf }
 0x19c   :  { %v1306_v33 = vmax.f32 %v1302_v18, %v1304_v28 }
 0x19e   :  { %v4287_v39 = vadd.f32 %v1306_v33, %v4221_v21 }
 0x1a0   :  { %v1310_v15 = vsel %vm236_vm3, %v4287_v39, -inf }
 0x1ab   :  { %3738 = vrot.lane.b32.xlu0 %v4134_v12, %s4021_s22 }
 0x1ad   :  { %536 = vmax.xlane.f32.xlu1 %v535_v13 }
 0x1af   :  { %3753 = vrot.lane.b32.xlu0 %v4134_v12, %s4022_s23 }
 0x1b1   :  { %691 = vmax.xlane.f32.xlu1 %v690_v19 }
 0x1b5   :  { %846 = vmax.xlane.f32.xlu1 %v845_v30 }
 0x1b9   :  { %1001 = vmax.xlane.f32.xlu1 %v1000_v26 }
 0x1bd   :  { %1156 = vmax.xlane.f32.xlu1 %v1155_v38 }
 0x1c1   :  { %1311 = vmax.xlane.f32.xlu1 %v1310_v15 }
 0x1d2   :  { %3748 = vrot.lane.b32.xlu1 %v4134_v12, %s4023_s24 }
 0x201   :  { %v385_v42 = vpop.xlane.xlu0 %384  ;;  %v242_v43 = vpop.xlane.xlu1 %241 }
 0x202   :  { %v387_v44 = vsub.f32 %v4173_v45, %v385_v42  ;;  %v244_v48 = vsub.f32 %v4176_v46, %v242_v43 }
 0x204   :  { %v247_v51 = vmul.f32 1.442695, %v244_v48  ;;  %v390_v52 = vmul.f32 1.442695, %v387_v44 }
 0x205   :  { %v3734_v53 = vpop.permute.xlu1 %3733 }
 0x206   :  { %v3736_v21 = vunpack.i.h.bf16 %v3734_v53  ;;  %v3735_v55 = vunpack.i.l.bf16 %v3734_v53  ;;  %v540_v56 = vpop.xlane.xlu0 %539  ;;  %3803 = vpow2.f32 %v247_v51 }
 0x207   :  { %v542_v57 = vsub.f32 %v4190_v58, %v540_v56  ;;  %3805 = vpow2.f32 %v390_v52 }
 0x208   :  { %v4296_v59 = vpack.c.bf16 %v3736_v21, %v3735_v55 }
 0x209   :  { %v545_v61 = vmul.f32 1.442695, %v542_v57 }
 0x20a   :  { %v695_v63 = vpop.xlane.xlu0 %694  ;;  %3531 = vmatprep.subr.bf16.mxu0 %v4296_v59 }
 0x20b   :  { %v697_v45 = vsub.f32 %v4200_v62, %v695_v63  ;;  %3807 = vpow2.f32 %v545_v61  ;;  %v4346_v63 = vpop.permute.xlu1 %3743 }
 0x20d   :  { %v700_v46 = vmul.f32 1.442695, %v697_v45 }
 0x20e   :  { %v850_v3 = vpop.xlane.xlu0 %849 }
 0x20f   :  { %v852_v4 = vsub.f32 %v4207_v9, %v850_v3  ;;  %3809 = vpow2.f32 %v700_v46 }
 0x210   :  { %v4301_v36 = vpop.eup %3803 }
 0x211   :  { %v855_v5 = vmul.f32 1.442695, %v852_v4  ;;  %v252_v58 = vsel %vm236_vm3, %v4301_v36, 0.0  ;;  %v4305_v7 = vpop.eup %3805 }
 0x212   :  { %v1005_v6 = vpop.xlane.xlu0 %1004  ;;  %253 = vadd.xlane.f32.xlu0 %v252_v58  ;;  %v395_v35 = vsel %vm236_vm3, %v4305_v7, 0.0 }
 0x213   :  { %v1007_v11 = vsub.f32 %v4216_v20, %v1005_v6  ;;  %3811 = vpow2.f32 %v855_v5 }
 0x215   :  { %v1010_v62 = vmul.f32 1.442695, %v1007_v11  ;;  %v4310_v9 = vpop.eup %3807 }
 0x216   :  { %v239_v40 = vpop.xlane.xlu0 %238  ;;  %396 = vadd.xlane.f32.xlu0 %v395_v35  ;;  %v550_v16 = vsel %vm236_vm3, %v4310_v9, 0.0 }
 0x217   :  { %v243_v13 = vsub.f32 %v4230_v34, %v239_v40  ;;  %3813 = vpow2.f32 %v1010_v62 }
 0x219   :  { %v245_v60 = vmul.f32 1.442695, %v243_v13  ;;  %v4315_v18 = vpop.eup %3809 }
 0x21a   :  { %v382_v17 = vpop.xlane.xlu0 %381  ;;  %551 = vadd.xlane.f32.xlu0 %v550_v16  ;;  %v705_v27 = vsel %vm236_vm3, %v4315_v18, 0.0 }
 0x21b   :  { %3815 = vpow2.f32 %v245_v60  ;;  %v386_v20 = vsub.f32 %v4239_v25, %v382_v17 }
 0x21d   :  { %v388_v19 = vmul.f32 1.442695, %v386_v20  ;;  %v4320_v30 = vpop.eup %3811 }
 0x21e   :  { %v1160_v28 = vpop.xlane.xlu0 %1159  ;;  %706 = vadd.xlane.f32.xlu0 %v705_v27  ;;  %v860_v26 = vsel %vm236_vm3, %v4320_v30, 0.0 }
 0x21f   :  { %3817 = vpow2.f32 %v388_v19  ;;  %v1162_v34 = vsub.f32 %v4244_v47, %v1160_v28 }
 0x221   :  { %v1165_v33 = vmul.f32 1.442695, %v1162_v34  ;;  %v4325_v15 = vpop.eup %3813 }
 0x222   :  { %v1315_v38 = vpop.xlane.xlu0 %1314  ;;  %861 = vadd.xlane.f32.xlu0 %v860_v26  ;;  %v1015_v44 = vsel %vm236_vm3, %v4325_v15, 0.0 }
 0x223   :  { %3819 = vpow2.f32 %v1165_v33  ;;  %v1317_v25 = vsub.f32 %v4249_v50, %v1315_v38 }
 0x225   :  { %v4328_v42 = vpop.eup %3815  ;;  %v1320_v43 = vmul.f32 1.442695, %v1317_v25 }
 0x226   :  { %v3739_v48 = vpop.permute.xlu0 %3738  ;;  %v249_v47 = vsel %vm236_vm3, %v4328_v42, 0.0  ;;  %1016 = vadd.xlane.f32.xlu0 %v1015_v44 }
 0x227   :  { %3821 = vpow2.f32 %v1320_v43  ;;  %v3741_v51 = vunpack.i.h.bf16 %v3739_v48  ;;  %v3740_v52 = vunpack.i.l.bf16 %v3739_v48  ;;  %250 = vadd.xlane.f32.xlu1 %v249_v47 }
 0x229   :  { %v4334_v53 = vpop.eup %3817  ;;  %v3534_v21 = vpack.c.bf16 %v3741_v51, %v3740_v52  ;;  %v4387_v51 = vld [vmem:[%s4914_s4] ss:$0 sm:$0xff]  ;;  %s4026_s4 = smov 8  }
 0x22a   :  { %v392_v50 = vsel %vm236_vm3, %v4334_v53, 0.0 }
 0x22b   :  { %393 = vadd.xlane.f32.xlu1 %v392_v50  ;;  %3535 = vmatprep.subr.bf16.mxu1 %v3534_v21 }
 0x22c   :  { %3537 = vmatpush3.bf16.msra.mxu1 %v3534_v21 }
 0x22d   :  { %v4338_v55 = vpop.eup %3819 }
 0x22e   :  { %v1170_v56 = vsel %vm236_vm3, %v4338_v55, 0.0 }
 0x22f   :  { %1171 = vadd.xlane.f32.xlu0 %v1170_v56 }
 0x231   :  { %v4342_v57 = vpop.eup %3821 }
 0x232   :  { %v1325_v61 = vsel %vm236_vm3, %v4342_v57, 0.0 }
 0x233   :  { %1326 = vadd.xlane.f32.xlu0 %v1325_v61 }
 0x23a   :  { %v537_v45 = vpop.xlane.xlu1 %536 }
 0x23b   :  { %v541_v46 = vsub.f32 %v4258_v8, %v537_v45 }
 0x23d   :  { %v543_v3 = vmul.f32 1.442695, %v541_v46  ;;  %v3746_v46 = vunpack.i.h.bf16 %v4346_v63 }
 0x23e   :  { %v692_v4 = vpop.xlane.xlu1 %691 }
 0x23f   :  { %3823 = vpow2.f32 %v543_v3  ;;  %v696_v5 = vsub.f32 %v4265_v49, %v692_v4  ;;  %v3745_v3 = vunpack.i.l.bf16 %v4346_v63 }
 0x241   :  { %v698_v6 = vmul.f32 1.442695, %v696_v5 }
 0x242   :  { %v847_v58 = vpop.xlane.xlu1 %846 }
 0x243   :  { %3825 = vpow2.f32 %v698_v6  ;;  %v851_v11 = vsub.f32 %v4272_v10, %v847_v58 }
 0x245   :  { %v853_v62 = vmul.f32 1.442695, %v851_v11 }
 0x246   :  { %v1002_v35 = vpop.xlane.xlu1 %1001 }
 0x247   :  { %3827 = vpow2.f32 %v853_v62  ;;  %v1006_v40 = vsub.f32 %v4277_v31, %v1002_v35 }
 0x249   :  { %v4352_v13 = vpop.eup %3823  ;;  %v1008_v60 = vmul.f32 1.442695, %v1006_v40  ;;  %3763 = vrot.lane.b32.xlu0 %v4134_v12, %s4024_s25  ;;  %v3538_v40 = vpack.c.bf16 %v3746_v46, %v3745_v3 }
 0x24a   :  { %v1157_v8 = vpop.xlane.xlu1 %1156  ;;  %v547_v49 = vsel %vm236_vm3, %v4352_v13, 0.0 }
 0x24b   :  { %3829 = vpow2.f32 %v1008_v60  ;;  %v1161_v16 = vsub.f32 %v4282_v37, %v1157_v8  ;;  %548 = vadd.xlane.f32.xlu1 %v547_v49 }
 0x24d   :  { %v4359_v10 = vpop.eup %3825  ;;  %v1163_v17 = vmul.f32 1.442695, %v1161_v16  ;;  %563 = vrot.lane.b32.xlu0 %v4387_v51, %s4021_s22 }
 0x24e   :  { %v1312_v20 = vpop.xlane.xlu1 %1311  ;;  %v702_v31 = vsel %vm236_vm3, %v4359_v10, 0.0 }
 0x24f   :  { %3831 = vpow2.f32 %v1163_v17  ;;  %v1316_v19 = vsub.f32 %v4287_v39, %v1312_v20  ;;  %703 = vadd.xlane.f32.xlu1 %v702_v31 }
 0x251   :  { %v4364_v27 = vpop.eup %3827  ;;  %v1318_v28 = vmul.f32 1.442695, %v1316_v19  ;;  %873 = vrot.lane.b32.xlu0 %v4387_v51, %s4023_s24 }
 0x252   :  { %v3749_v34 = vpop.permute.xlu1 %3748  ;;  %v857_v33 = vsel %vm236_vm3, %v4364_v27, 0.0 }
 0x253   :  { %3833 = vpow2.f32 %v1318_v28  ;;  %v3751_v37 = vunpack.i.h.bf16 %v3749_v34  ;;  %v3750_v26 = vunpack.i.l.bf16 %v3749_v34  ;;  %858 = vadd.xlane.f32.xlu1 %v857_v33 }
 0x255   :  { %v4368_v38 = vpop.eup %3829  ;;  %v4370_v25 = vpack.c.bf16 %v3751_v37, %v3750_v26  ;;  %1183 = vrot.lane.b32.xlu0 %v4387_v51, %s4025_s26 }
 0x256   :  { %v1012_v43 = vsel %vm236_vm3, %v4368_v38, 0.0 }
 0x257   :  { %1013 = vadd.xlane.f32.xlu1 %v1012_v43  ;;  %3543 = vmatprep.subr.bf16.mxu1 %v4370_v25 }
 0x259   :  { %v4375_v39 = vpop.eup %3831 }
 0x25a   :  { %v1167_v44 = vsel %vm236_vm3, %v4375_v39, 0.0 }
 0x25b   :  { %1168 = vadd.xlane.f32.xlu1 %v1167_v44 }
 0x25d   :  { %v4379_v48 = vpop.eup %3833 }
 0x25e   :  { %v1322_v47 = vsel %vm236_vm3, %v4379_v48, 0.0 }
 0x25f   :  { %1323 = vadd.xlane.f32.xlu1 %v1322_v47 }
 0x270   :  { %3758 = vrot.lane.b32.xlu1 %v4134_v12, %s4025_s26  ;;  %v3754_v12 = vpop.permute.xlu0 %3753 }
 0x271   :  { %v3756_v62 = vunpack.i.h.bf16 %v3754_v12  ;;  %v3755_v35 = vunpack.i.l.bf16 %v3754_v12 }
 0x274   :  { %408 = vrot.lane.b32.xlu1 %v4387_v51, %s4019_s20 }
 0x278   :  { %718 = vrot.lane.b32.xlu1 %v4387_v51, %s4020_s21 }
 0x27c   :  { %1028 = vrot.lane.b32.xlu1 %v4387_v51, %s4022_s23 }
 0x280   :  { %1338 = vrot.lane.b32.xlu1 %v4387_v51, %s4024_s25 }
 0x29f   :  { %v254_v52 = vpop.xlane.xlu0 %253 }
 0x2a0   :  { %3835 = vrcp.f32 %v254_v52 }
 0x2a3   :  { %v397_v50 = vpop.xlane.xlu0 %396 }
 0x2a7   :  { %v552_v58 = vpop.xlane.xlu0 %551 }
 0x2aa   :  { %v3836_v61 = vpop.eup %3835 }
 0x2ab   :  { %v258_v6 = vmul.f32 %v3836_v61, %v4301_v36  ;;  %v707_v36 = vpop.xlane.xlu0 %706 }
 0x2af   :  { %v862_v8 = vpop.xlane.xlu0 %861 }
 0x2b3   :  { %v1017_v49 = vpop.xlane.xlu0 %1016 }
 0x2b4   :  { %v251_v21 = vpop.xlane.xlu1 %250 }
 0x2b5   :  { %3837 = vrcp.f32 %v251_v21 }
 0x2b6   :  { %3839 = vrcp.f32 %v397_v50 }
 0x2b8   :  { %v394_v56 = vpop.xlane.xlu1 %393 }
 0x2b9   :  { %3841 = vrcp.f32 %v394_v56 }
 0x2ba   :  { %3843 = vrcp.f32 %v552_v58 }
 0x2bc   :  { %v1172_v16 = vpop.xlane.xlu0 %1171 }
 0x2bf   :  { %v3838_v45 = vpop.eup %3837 }
 0x2c0   :  { %v257_v4 = vmul.f32 %v3838_v45, %v4328_v42  ;;  %v3840_v5 = vpop.eup %3839  ;;  %v3546_v42 = vpack.c.bf16 %v3756_v62, %v3755_v35 }
 0x2c1   :  { %v401_v63 = vmul.f32 %v3840_v5, %v4305_v7 }
 0x2c2   :  { %3355 = vmatprep.mubr.msk.f32.mxu0 %vm236_vm3, %v257_v4 }
 0x2c3   :  { %v3842_v11 = vpop.eup %3841  ;;  %3356 = vmatmul.mubr.msk.f32.vlgmr.msra.gmra.mrb[2].mxu0 %vm236_vm3, %v258_v6 }
 0x2c4   :  { %v400_v60 = vmul.f32 %v3842_v11, %v4334_v53  ;;  %3533 = vmatpush3.bf16.msra.mxu0 %v4296_v59  ;;  %v1327_v59 = vpop.xlane.xlu0 %1326  ;;  %v3844_v20 = vpop.eup %3843 }
 0x2c5   :  { %3539 = vmatprep.subr.bf16.mxu0 %v3538_v40  ;;  %v556_v33 = vmul.f32 %v3844_v20, %v4310_v9 }
 0x2c6   :  { %3362 = vmatprep.mubr.msk.f32.mxu0 %vm236_vm3, %v400_v60 }
 0x2c7   :  { %3363 = vmatmul.mubr.msk.f32.vlgmr.msra.gmra.mrb[4].mxu0 %vm236_vm3, %v401_v63 }
 0x2c8   :  { %3541 = vmatpush3.bf16.msra.mxu0 %v3538_v40  ;;  %v3764_v19 = vpop.permute.xlu0 %3763 }
 0x2c9   :  { %3547 = vmatprep.subr.bf16.mxu0 %v3546_v42  ;;  %v3766_v43 = vunpack.i.h.bf16 %v3764_v19  ;;  %v3765_v44 = vunpack.i.l.bf16 %v3764_v19 }
 0x2cb   :  { %v3554_v21 = vpack.c.bf16 %v3766_v43, %v3765_v44 }
 0x2d8   :  { %v549_v17 = vpop.xlane.xlu1 %548 }
 0x2d9   :  { %3845 = vrcp.f32 %v549_v17 }
 0x2da   :  { %3847 = vrcp.f32 %v707_v36 }
 0x2dc   :  { %v704_v53 = vpop.xlane.xlu1 %703 }
 0x2dd   :  { %3849 = vrcp.f32 %v704_v53 }
 0x2de   :  { %3851 = vrcp.f32 %v862_v8 }
 0x2e0   :  { %v859_v7 = vpop.xlane.xlu1 %858 }
 0x2e1   :  { %3853 = vrcp.f32 %v859_v7 }
 0x2e2   :  { %3855 = vrcp.f32 %v1017_v49 }
 0x2e3   :  { %v3846_v31 = vpop.eup %3845 }
 0x2e4   :  { %v1014_v28 = vpop.xlane.xlu1 %1013  ;;  %v555_v34 = vmul.f32 %v3846_v31, %v4352_v13  ;;  %v3848_v37 = vpop.eup %3847 }
 0x2e5   :  { %3857 = vrcp.f32 %v1014_v28  ;;  %v711_v52 = vmul.f32 %v3848_v37, %v4315_v18 }
 0x2e6   :  { %3369 = vmatprep.mubr.msk.f32.mxu1 %vm236_vm3, %v555_v34 }
 0x2e7   :  { %v3850_v26 = vpop.eup %3849  ;;  %3370 = vmatmul.mubr.msk.f32.vlgmr.msra.gmra.mrb[2].mxu1 %vm236_vm3, %v556_v33 }
 0x2e8   :  { %3545 = vmatpush3.bf16.msra.mxu1 %v4370_v25  ;;  %v1169_v47 = vpop.xlane.xlu1 %1168  ;;  %v710_v12 = vmul.f32 %v3850_v26, %v4359_v10  ;;  %v3852_v13 = vpop.eup %3851 }
 0x2e9   :  { %3859 = vrcp.f32 %v1169_v47  ;;  %v866_v25 = vmul.f32 %v3852_v13, %v4320_v30  ;;  %v564_v26 = vpop.permute.xlu0 %563 }
 0x2ea   :  { %3861 = vrcp.f32 %v1172_v16  ;;  %3376 = vmatprep.mubr.msk.f32.mxu0 %vm236_vm3, %v710_v12 }
 0x2eb   :  { %v3854_v9 = vpop.eup %3853  ;;  %3377 = vmatmul.mubr.msk.f32.vlgmr.msra.gmra.mrb[6].mxu0 %vm236_vm3, %v711_v52  ;;  %3863 = vrcp.f32 %v1327_v59 }
 0x2ec   :  { %3549 = vmatpush3.bf16.msra.mxu0 %v3546_v42  ;;  %v1324_v50 = vpop.xlane.xlu1 %1323  ;;  %v865_v56 = vmul.f32 %v3854_v9, %v4364_v27  ;;  %v3856_v10 = vpop.eup %3855 }
 0x2ed   :  { %3865 = vrcp.f32 %v1324_v50  ;;  %3555 = vmatprep.subr.bf16.mxu0 %v3554_v21  ;;  %v1021_v46 = vmul.f32 %v3856_v10, %v4325_v15 }
 0x2ee   :  { %3383 = vmatprep.mubr.msk.f32.mxu1 %vm236_vm3, %v865_v56 }
 0x2ef   :  { %v3858_v18 = vpop.eup %3857  ;;  %3384 = vmatmul.mubr.msk.f32.vlgmr.msra.gmra.mrb[4].mxu1 %vm236_vm3, %v866_v25  ;;  %v874_v25 = vpop.permute.xlu0 %873 }
 0x2f0   :  { %v3759_v61 = vpop.permute.xlu1 %3758  ;;  %v1020_v45 = vmul.f32 %v3858_v18, %v4368_v38 }
 0x2f1   :  { %v3761_v3 = vunpack.i.h.bf16 %v3759_v61  ;;  %v3760_v4 = vunpack.i.l.bf16 %v3759_v61 }
 0x2f2   :  { %3390 = vmatprep.mubr.msk.f32.mxu0 %vm236_vm3, %v1020_v45 }
 0x2f3   :  { %v3860_v27 = vpop.eup %3859  ;;  %v3550_v5 = vpack.c.bf16 %v3761_v3, %v3760_v4  ;;  %3391 = vmatmul.mubr.msk.f32.vlgmr.msra.gmra.mrb[8].mxu0 %vm236_vm3, %v1021_v46 }
 0x2f4   :  { %v3862_v30 = vpop.eup %3861  ;;  %3557 = vmatpush3.bf16.msra.mxu0 %v3554_v21  ;;  %v1175_v6 = vmul.f32 %v3860_v27, %v4375_v39 }
 0x2f5   :  { %3551 = vmatprep.subr.bf16.mxu1 %v3550_v5  ;;  %v3864_v58 = vpop.eup %3863  ;;  %v1176_v15 = vmul.f32 %v3862_v30, %v4338_v55 }
 0x2f6   :  { %3553 = vmatpush3.bf16.msra.mxu1 %v3550_v5  ;;  %3397 = vmatprep.mubr.msk.f32.mxu1 %vm236_vm3, %v1175_v6  ;;  %v1331_v62 = vmul.f32 %v3864_v58, %v4342_v57 }
 0x2f7   :  { %v3866_v38 = vpop.eup %3865 }
 0x2f8   :  { %v1330_v11 = vmul.f32 %v3866_v38, %v4379_v48  ;;  %v409_v48 = vpop.permute.xlu1 %408 }
 0x2f9   :  { %3398 = vmatmul.mubr.msk.f32.vlgmr.msra.gmra.mrb[6].mxu1 %vm236_vm3, %v1176_v15 }
 0x2fa   :  { %3404 = vmatprep.mubr.msk.f32.mxu0 %vm236_vm3, %v1330_v11  ;;  %1560 = vmatprep.mubr.f32.mxu1 %v4010_v1 }
 0x2fb   :  { %3405 = vmatmul.mubr.msk.f32.vlgmr.msra.gmra.mrb[10].mxu0 %vm236_vm3, %v1331_v62 }
 0x2fc   :  { %1637 = vmatprep.mubr.f32.mxu0 %v4010_v1  ;;  %v719_v52 = vpop.permute.xlu1 %718 }
 0x300   :  { %v1029_v4 = vpop.permute.xlu1 %1028 }
 0x396   :  { %v3357_v39 = vpop.f32.mrb[2].mxu0 }
 0x397   :  { %v343_v35 = vadd.f32 %v3357_v39, %v4387_v51  ;;  %v337_v40 = vpop.f32.mrb[3].mxu0 }
 0x398   :  { %v338_v55 = vadd.f32 %v4387_v51, %v337_v40  ;;  %v1184_v40 = vpop.permute.xlu0 %1183 }
 0x399   :  { %v349_v60 = vmin.f32 %v343_v35, 0.0  ;;  %vm347_vm4 = vcmp.gt.f32.partialorder %v343_v35, 0.0 }
 0x39a   :  { %v348_v63 = vmin.f32 %v338_v55, 0.0  ;;  %v3364_v57 = vpop.f32.mrb[4].mxu0  ;;  %vm346_vm5 = vcmp.gt.f32.partialorder %v338_v55, 0.0 }
 0x39b   :  { %v352_v42 = vmul.f32 1.442695, %v349_v60  ;;  %v483_v36 = vpop.f32.mrb[5].mxu0  ;;  %v4445_v33 = vadd.f32 %v3364_v57, %v409_v48 }
 0x39c   :  { %v350_v8 = vmul.f32 1.442695, %v348_v63  ;;  %v484_v49 = vadd.f32 %v483_v36, %v409_v48 }
 0x39d   :  { %3867 = vpow2.f32 %v352_v42  ;;  %v495_v37 = vmin.f32 %v4445_v33, 0.0  ;;  %vm493_vm8 = vcmp.gt.f32.partialorder %v4445_v33, 0.0 }
 0x39e   :  { %3869 = vpow2.f32 %v350_v8  ;;  %v494_v16 = vmin.f32 %v484_v49, 0.0  ;;  %vm492_vm6 = vcmp.gt.f32.partialorder %v484_v49, 0.0  ;;  %v1339_v8 = vpop.permute.xlu1 %1338 }
 0x39f   :  { %v498_v44 = vmul.f32 1.442695, %v495_v37 }
 0x3a0   :  { %v496_v17 = vmul.f32 1.442695, %v494_v16 }
 0x3a2   :  { %3871 = vpow2.f32 %v496_v17 }
 0x3a3   :  { %3873 = vpow2.f32 %v498_v44  ;;  %v1455_v44 = vld [vmem:[#allocation3 + $0x40] sm:$0xff] }
 0x3a7   :  { %v3868_v53 = vpop.eup %3867 }
 0x3a8   :  { %v3870_v59 = vpop.eup %3869  ;;  %v3176_v7 = vadd.f32 -1.0, %v3868_v53 }
 0x3a9   :  { %v3175_v20 = vadd.f32 -1.0, %v3870_v59 }
 0x3aa   :  { %v357_v31 = vsel %vm347_vm4, %v343_v35, %v3176_v7 }
 0x3ab   :  { %359 = vst.msk [vmem:[#allocation2 + $0x8] sm:$0xff] %vm59_vm1, %v357_v31  ;;  %v356_v51 = vsel %vm346_vm5, %v338_v55, %v3175_v20  ;;  %v1448_v31 = vld [vmem:[#allocation3 + $0x8] sm:$0xff] }
 0x3ac   :  { %v3872_v19 = vpop.eup %3871  ;;  %358 = vst.msk [vmem:[#allocation2] sm:$0xff] %vm59_vm1, %v356_v51 }
 0x3ad   :  { %v3179_v28 = vadd.f32 -1.0, %v3872_v19  ;;  %v3874_v15 = vpop.eup %3873 }
 0x3ae   :  { %v3180_v63 = vadd.f32 -1.0, %v3874_v15 }
 0x3af   :  { %v502_v34 = vsel %vm492_vm6, %v484_v49, %v3179_v28  ;;  %vm512_vm6 = vcmask 130112  }
 0x3b0   :  { %506 = vrot.lane.b32.xlu0 %v502_v34, %s4026_s4  ;;  %v503_v37 = vsel %vm493_vm8, %v4445_v33, %v3180_v63  ;;  %v1458_v33 = vld [vmem:[#allocation3 + $0x58] sm:$0xff]  ;;  %vm822_vm8 = vcmask 261312  }
 0x3ba   :  { %v3371_v43 = vpop.f32.mrb[2].mxu1 }
 0x3bb   :  { %v638_v47 = vpop.f32.mrb[3].mxu1  ;;  %v4453_v3 = vadd.f32 %v3371_v43, %v564_v26  ;;  %v1450_v43 = vld [vmem:[#allocation3 + $0x18] sm:$0xff] }
 0x3bc   :  { %v639_v12 = vadd.f32 %v638_v47, %v564_v26  ;;  %v1453_v26 = vld [vmem:[#allocation3 + $0x30] sm:$0xff] }
 0x3bd   :  { %v650_v11 = vmin.f32 %v4453_v3, 0.0  ;;  %vm648_vm15 = vcmp.gt.f32.partialorder %v4453_v3, 0.0 }
 0x3be   :  { %v649_v13 = vmin.f32 %v639_v12, 0.0  ;;  %v3378_v9 = vpop.f32.mrb[6].mxu0  ;;  %vm647_vm7 = vcmp.gt.f32.partialorder %v639_v12, 0.0 }
 0x3bf   :  { %v793_v21 = vpop.f32.mrb[7].mxu0  ;;  %v4455_v27 = vadd.f32 %v3378_v9, %v719_v52  ;;  %v653_v57 = vmul.f32 1.442695, %v650_v11  ;;  %v1449_v9 = vld [vmem:[#allocation3 + $0x10] sm:$0xff] }
 0x3c0   :  { %v651_v50 = vmul.f32 1.442695, %v649_v13  ;;  %v4448_v56 = vadd.f32 %v793_v21, %v719_v52  ;;  %v1447_v52 = vld [vmem:[#allocation3] sm:$0xff]  ;;  %v1452_v13 = vld [vmem:[#allocation3 + $0x28] sm:$0xff] }
 0x3c1   :  { %v805_v62 = vmin.f32 %v4455_v27, 0.0  ;;  %vm803_vm14 = vcmp.gt.f32.partialorder %v4455_v27, 0.0 }
 0x3c2   :  { %3875 = vpow2.f32 %v651_v50  ;;  %v804_v10 = vmin.f32 %v4448_v56, 0.0  ;;  %v3385_v18 = vpop.f32.mrb[4].mxu1  ;;  %vm802_vm9 = vcmp.gt.f32.partialorder %v4448_v56, 0.0 }
 0x3c3   :  { %v948_v61 = vpop.f32.mrb[5].mxu1  ;;  %v4465_v42 = vadd.f32 %v3385_v18, %v874_v25  ;;  %v808_v16 = vmul.f32 1.442695, %v805_v62  ;;  %v1463_v18 = vld [vmem:[#allocation3 + $0x80] sm:$0xff]  ;;  %v3574_v62 = vpack.c.bf16 %v1455_v44, %v1450_v43  ;;  %v1472_v43 = vld [vmem:[#allocation3 + $0xc8] sm:$0xff]  ;;  %v1469_v44 = vld [vmem:[#allocation3 + $0xb0] sm:$0xff] }
 0x3c4   :  { %v806_v45 = vmul.f32 1.442695, %v804_v10  ;;  %v4451_v46 = vadd.f32 %v948_v61, %v874_v25  ;;  %v1454_v10 = vld [vmem:[#allocation3 + $0x38] sm:$0xff] }
 0x3c5   :  { %v960_v47 = vmin.f32 %v4465_v42, 0.0  ;;  %v3576_v63 = vpack.c.bf16 %v1454_v10, %v1449_v9  ;;  %3575 = vmatprep.subr.bf16.mxu0 %v3574_v62  ;;  %v1483_v9 = vld [vmem:[#allocation3 + $0x120] sm:$0xff]  ;;  %vm958_vm2 = vcmp.gt.f32.partialorder %v4465_v42, 0.0 }
 0x3c6   :  { %3877 = vpow2.f32 %v806_v45  ;;  %v959_v5 = vmin.f32 %v4451_v46, 0.0  ;;  %v3392_v30 = vpop.f32.mrb[8].mxu0  ;;  %vm957_vm10 = vcmp.gt.f32.partialorder %v4451_v46, 0.0 }
 0x3c7   :  { %v1103_v6 = vpop.f32.mrb[9].mxu0  ;;  %v4463_v35 = vadd.f32 %v3392_v30, %v1029_v4  ;;  %v1465_v30 = vld [vmem:[#allocation3 + $0x90] sm:$0xff]  ;;  %3577 = vmatpush1.bf16.msra.mxu0 %v3576_v63 }
 0x3c8   :  { %v961_v58 = vmul.f32 1.442695, %v959_v5  ;;  %v4458_v38 = vadd.f32 %v1103_v6, %v1029_v4  ;;  %v3558_v4 = vpack.c.bf16 %v1453_v26, %v1448_v31  ;;  %v1460_v5 = vld [vmem:[#allocation3 + $0x68] sm:$0xff]  ;;  %v1457_v6 = vld [vmem:[#allocation3 + $0x50] sm:$0xff]  ;;  %v1475_v31 = vld [vmem:[#allocation3 + $0xe0] sm:$0xff] }
 0x3c9   :  { %v1115_v59 = vmin.f32 %v4463_v35, 0.0  ;;  %vm1113_vm1 = vcmp.gt.f32.partialorder %v4463_v35, 0.0 }
 0x3ca   :  { %3879 = vpow2.f32 %v961_v58  ;;  %v1114_v39 = vmin.f32 %v4458_v38, 0.0  ;;  %3559 = vmatprep.subr.bf16.mxu1 %v3558_v4  ;;  %vm1112_vm11 = vcmp.gt.f32.partialorder %v4458_v38, 0.0 }
 0x3cb   :  { %v1118_v61 = vmul.f32 1.442695, %v1115_v59 }
 0x3cc   :  { %v3876_v55 = vpop.eup %3875  ;;  %v1116_v60 = vmul.f32 1.442695, %v1114_v39  ;;  %v3399_v48 = vpop.f32.mrb[6].mxu1  ;;  %v1462_v39 = vld [vmem:[#allocation3 + $0x78] sm:$0xff] }
 0x3cd   :  { %v1258_v36 = vpop.f32.mrb[7].mxu1  ;;  %v3183_v49 = vadd.f32 -1.0, %v3876_v55  ;;  %v4480_v21 = vadd.f32 %v3399_v48, %v1184_v40  ;;  %v963_v55 = vmul.f32 1.442695, %v960_v47  ;;  %v3560_v48 = vpack.c.bf16 %v1452_v13, %v1447_v52  ;;  %v1474_v47 = vld [vmem:[#allocation3 + $0xd8] sm:$0xff] }
 0x3ce   :  { %3881 = vpow2.f32 %v1116_v60  ;;  %v4467_v17 = vadd.f32 %v1258_v36, %v1184_v40  ;;  %v3406_v53 = vpop.f32.mrb[10].mxu0  ;;  %v1459_v40 = vld [vmem:[#allocation3 + $0x60] sm:$0xff]  ;;  %v3562_v36 = vpack.c.bf16 %v1463_v18, %v1458_v33  ;;  %v1478_v13 = vld [vmem:[#allocation3 + $0xf8] sm:$0xff]  ;;  %v3584_v18 = vpack.c.bf16 %v1474_v47, %v1469_v44 }
 0x3cf   :  { %v1413_v7 = vpop.f32.mrb[11].mxu0  ;;  %v657_v20 = vsel %vm647_vm7, %v639_v12, %v3183_v49  ;;  %v4472_v28 = vadd.f32 %v3406_v53, %v1339_v8  ;;  %3883 = vpow2.f32 %v653_v57  ;;  %v1270_v57 = vmin.f32 %v4480_v21, 0.0  ;;  %v1468_v49 = vld [vmem:[#allocation3 + $0xa8] sm:$0xff]  ;;  %v1470_v53 = vld [vmem:[#allocation3 + $0xb8] sm:$0xff]  ;;  %3561 = vmatpush1.bf16.msra.mxu1 %v3560_v48 }
 0x3d0   :  { %v3878_v51 = vpop.eup %3877  ;;  %v1269_v19 = vmin.f32 %v4467_v17, 0.0  ;;  %v4474_v34 = vadd.f32 %v1413_v7, %v1339_v8  ;;  %661 = vrot.lane.b32.xlu1 %v657_v20, %s4027_s30  ;;  %3885 = vpow2.f32 %v808_v16  ;;  %v3578_v8 = vpack.c.bf16 %v1465_v30, %v1460_v5  ;;  %v1473_v16 = vld [vmem:[#allocation3 + $0xd0] sm:$0xff]  ;;  %3563 = vmatprep.subr.bf16.mxu1 %v3562_v36 }
 0x3d1   :  { %v3187_v12 = vadd.f32 -1.0, %v3878_v51  ;;  %v1425_v15 = vmin.f32 %v4472_v28, 0.0  ;;  %v3564_v7 = vpack.c.bf16 %v1462_v39, %v1457_v6  ;;  %v1467_v51 = vld [vmem:[#allocation3 + $0xa0] sm:$0xff]  ;;  %v3566_v26 = vpack.c.bf16 %v1473_v16, %v1468_v49  ;;  %v1482_v6 = vld [vmem:[#allocation3 + $0x118] sm:$0xff] }
 0x3d2   :  { %v1271_v50 = vmul.f32 1.442695, %v1269_v19  ;;  %v1424_v25 = vmin.f32 %v4474_v34, 0.0  ;;  %3579 = vmatprep.subr.bf16.mxu0 %v3578_v8  ;;  %v1273_v52 = vmul.f32 1.442695, %v1270_v57  ;;  %v3568_v33 = vpack.c.bf16 %v1472_v43, %v1467_v51 }
 0x3d3   :  { %v812_v45 = vsel %vm802_vm9, %v4448_v56, %v3187_v12  ;;  %v1464_v56 = vld [vmem:[#allocation3 + $0x88] sm:$0xff]  ;;  %3565 = vmatpush1.bf16.msra.mxu1 %v3564_v7  ;;  %v3570_v5 = vpack.c.bf16 %v1483_v9, %v1478_v13  ;;  %vm1267_vm12 = vcmp.gt.f32.partialorder %v4467_v17, 0.0  ;;  %vm1422_vm13 = vcmp.gt.f32.partialorder %v4474_v34, 0.0  ;;  %v1466_v13 = vld [vmem:[#allocation3 + $0x98] sm:$0xff] }
 0x3d4   :  { %v3880_v58 = vpop.eup %3879  ;;  %3887 = vpow2.f32 %v1271_v50  ;;  %v1426_v11 = vmul.f32 1.442695, %v1424_v25  ;;  %816 = vrot.lane.b32.xlu0 %v812_v45, %s4028_s12  ;;  %508 = vrot.lane.b32.xlu1 %v503_v37, %s4026_s4  ;;  %v3580_v20 = vpack.c.bf16 %v1464_v56, %v1459_v40  ;;  %v1428_v37 = vmul.f32 1.442695, %v1425_v15  ;;  %v1480_v50 = vld [vmem:[#allocation3 + $0x108] sm:$0xff]  ;;  %v1477_v45 = vld [vmem:[#allocation3 + $0xf0] sm:$0xff] }
 0x3d5   :  { %v3191_v60 = vadd.f32 -1.0, %v3880_v58  ;;  %3567 = vmatprep.subr.bf16.mxu1 %v3566_v26  ;;  %v1479_v58 = vld [vmem:[#allocation3 + $0x100] sm:$0xff]  ;;  %v1484_v15 = vld [vmem:[#allocation3 + $0x128] sm:$0xff]  ;;  %v3572_v62 = vpack.c.bf16 %v1482_v6, %v1477_v45  ;;  %vm1423_vm4 = vcmp.gt.f32.partialorder %v4472_v28, 0.0  ;;  %vm1268_vm5 = vcmp.gt.f32.partialorder %v4480_v21, 0.0 }
 0x3d6   :  { %3889 = vpow2.f32 %v1426_v11  ;;  %3581 = vmatpush1.bf16.msra.mxu0 %v3580_v20  ;;  %v3588_v39 = vpack.c.bf16 %v1484_v15, %v1479_v58  ;;  %v1451_v40 = vld [vmem:[#allocation3 + $0x20] sm:$0xff]  ;;  %v1456_v56 = vld [vmem:[#allocation3 + $0x48] sm:$0xff]  ;;  %vm667_vm7 = vcmask 195712   ;;  %vm977_vm9 = vcmask 326912  }
 0x3d7   :  { %v967_v59 = vsel %vm957_vm10, %v4451_v46, %v3191_v60  ;;  %3891 = vpow2.f32 %v1118_v61  ;;  %v3582_v46 = vpack.c.bf16 %v1475_v31, %v1470_v53  ;;  %v1485_v61 = vld [vmem:[#allocation3 + $0x130] sm:$0xff]  ;;  %3569 = vmatpush1.bf16.msra.mxu1 %v3568_v33  ;;  %v4497_v60 = vpack.c.bf16 %v1456_v56, %v1451_v40  ;;  %v1471_v33 = vld [vmem:[#allocation3 + $0xc0] sm:$0xff] }
 0x3d8   :  { %v3882_v19 = vpop.eup %3881  ;;  %971 = vrot.lane.b32.xlu1 %v967_v59, %s4029_s5  ;;  %3893 = vpow2.f32 %v963_v55  ;;  %v3586_v30 = vpack.c.bf16 %v1485_v61, %v1480_v50  ;;  %3571 = vmatprep.subr.bf16.mxu1 %v3570_v5  ;;  %vm1132_vm10 = vcmask 392512   ;;  %v1486_v5 = vld [vmem:[#allocation3 + $0x138] sm:$0xff] }
 0x3d9   :  { %v3195_v12 = vadd.f32 -1.0, %v3882_v19  ;;  %v3884_v25 = vpop.eup %3883  ;;  %3895 = vpow2.f32 %v1428_v37  ;;  %3583 = vmatprep.subr.bf16.mxu0 %v3582_v46 }
 0x3da   :  { %v3886_v4 = vpop.eup %3885  ;;  %3897 = vpow2.f32 %v1273_v52  ;;  %3585 = vmatpush1.bf16.msra.mxu0 %v3584_v18  ;;  %v3184_v49 = vadd.f32 -1.0, %v3884_v25  ;;  %v1461_v52 = vld [vmem:[#allocation3 + $0x70] sm:$0xff]  ;;  %v1476_v18 = vld [vmem:[#allocation3 + $0xe8] sm:$0xff] }
 0x3db   :  { %v1122_v10 = vsel %vm1112_vm11, %v4458_v38, %v3195_v12  ;;  %3587 = vmatprep.subr.bf16.mxu0 %v3586_v30  ;;  %v3188_v57 = vadd.f32 -1.0, %v3886_v4  ;;  %3573 = vmatpush1.bf16.msra.mxu1 %v3572_v62  ;;  %vm1287_vm11 = vcmask 458112   ;;  %v3594_v50 = vpack.c.bf16 %v1466_v13, %v1461_v52  ;;  %v1481_v4 = vld [vmem:[#allocation3 + $0x110] sm:$0xff] }
 0x3dc   :  { %1126 = vrot.lane.b32.xlu0 %v1122_v10, %s4007_s28  ;;  %3591 = vmatprep.subr.bf16.mxu1 %v4497_v60  ;;  %v3598_v61 = vpack.c.bf16 %v1476_v18, %v1471_v33  ;;  %v3602_v6 = vpack.c.bf16 %v1486_v5, %v1481_v4  ;;  %v4032_v62 = vmov 1   ;;  %v4607_v18 = vld [vmem:[%s4911_s1 + $0x8] sm:$0xff] }
 0x3dd   :  { %3767 = vset.pattern.permute.xlu1 %v4032_v62  ;;  %3768 = vset.pattern.permute.xlu0 %v4032_v62 }
 0x3de   :  { %v3888_v11 = vpop.eup %3887  ;;  %3589 = vmatpush1.bf16.msra.mxu0 %v3588_v39 }
 0x3df   :  { %v3199_v38 = vadd.f32 -1.0, %v3888_v11  ;;  %3606 = vmatprep.subr.bf16.mxu0 %v4008_v0 }
 0x3e0   :  { %v3890_v55 = vpop.eup %3889 }
 0x3e1   :  { %v1277_v48 = vsel %vm1267_vm12, %v4467_v17, %v3199_v38  ;;  %v3203_v63 = vadd.f32 -1.0, %v3890_v55  ;;  %v3892_v36 = vpop.eup %3891  ;;  %v813_v17 = vsel %vm803_vm14, %v4455_v27, %v3188_v57  ;;  %vm1442_vm12 = vcmask 523712   ;;  %v1487_v38 = vld [vmem:[%s4916_s6] sm:$0xff] }
 0x3e2   :  { %1281 = vrot.lane.b32.xlu1 %v1277_v48, %s4030_s13  ;;  %v3894_v16 = vpop.eup %3893  ;;  %v3196_v53 = vadd.f32 -1.0, %v3892_v36 }
 0x3e3   :  { %v1432_v8 = vsel %vm1422_vm13, %v4474_v34, %v3203_v63  ;;  %v3896_v59 = vpop.eup %3895  ;;  %v658_v34 = vsel %vm648_vm15, %v4453_v3, %v3184_v49  ;;  %v3192_v7 = vadd.f32 -1.0, %v3894_v16  ;;  %vm1489_vm13 = vcmask 523264  }
 0x3e4   :  { %1436 = vrot.lane.b32.xlu0 %v1432_v8, %s4031_s14  ;;  %v3898_v20 = vpop.eup %3897  ;;  %v1123_v31 = vsel %vm1113_vm1, %v4463_v35, %v3196_v53  ;;  %v3204_v51 = vadd.f32 -1.0, %v3896_v59  ;;  %vm4541_vm14 = vmpackc.low %vm1489_vm13, %vm1489_vm13 }
 0x3e5   :  { %v968_v27 = vsel %vm958_vm2, %v4465_v42, %v3192_v7  ;;  %v3200_v19 = vadd.f32 -1.0, %v3898_v20 }
 0x3e6   :  { %818 = vrot.lane.b32.xlu1 %v813_v17, %s4028_s12  ;;  %v1433_v3 = vsel %vm1423_vm4, %v4472_v28, %v3204_v51 }
 0x3e7   :  { %v1278_v37 = vsel %vm1268_vm5, %v4480_v21, %v3200_v19  ;;  %v4034_v19 = vmov 2  }
 0x3e8   :  { %663 = vrot.lane.b32.xlu0 %v658_v34, %s4027_s30 }
 0x3ea   :  { %1128 = vrot.lane.b32.xlu1 %v1123_v31, %s4007_s28  ;;  %v4033_v31 = vmov 0  }
 0x3ec   :  { %973 = vrot.lane.b32.xlu0 %v968_v27, %s4029_s5 }
 0x3ee   :  { %1438 = vrot.lane.b32.xlu1 %v1433_v3, %s4031_s14  ;;  %v4035_v3 = vmov 3  }
 0x3f0   :  { %1283 = vrot.lane.b32.xlu0 %v1278_v37, %s4030_s13  ;;  %v4036_v37 = vmov 4  }
 0x422   :  { %v507_v35 = vpop.permute.xlu0 %506 }
 0x423   :  { %513 = vst.msk [vmem:[#allocation2] sm:$0xff] %vm512_vm6, %v507_v35  ;;  %v4037_v35 = vmov 6  }
 0x442   :  { %v662_v26 = vpop.permute.xlu1 %661 }
 0x443   :  { %668 = vst.msk [vmem:[#allocation2] sm:$0xff] %vm667_vm7, %v662_v26  ;;  %v4038_v26 = vmov 7  }
 0x446   :  { %v817_v42 = vpop.permute.xlu0 %816  ;;  %v509_v43 = vpop.permute.xlu1 %508 }
 0x447   :  { %823 = vst.msk [vmem:[#allocation2] sm:$0xff] %vm822_vm8, %v817_v42  ;;  %v4039_v42 = vmov 5  }
 0x448   :  { %514 = vst.msk [vmem:[#allocation2 + $0x8] sm:$0xff] %vm512_vm6, %v509_v43 }
 0x44a   :  { %v972_v28 = vpop.permute.xlu1 %971 }
 0x44b   :  { %978 = vst.msk [vmem:[#allocation2] sm:$0xff] %vm977_vm9, %v972_v28 }
 0x44e   :  { %v1127_v21 = vpop.permute.xlu0 %1126 }
 0x44f   :  { %1133 = vst.msk [vmem:[#allocation2] sm:$0xff] %vm1132_vm10, %v1127_v21 }
 0x454   :  { %v1282_v44 = vpop.permute.xlu1 %1281 }
 0x455   :  { %1288 = vst.msk [vmem:[#allocation2] sm:$0xff] %vm1287_vm11, %v1282_v44 }
 0x456   :  { %v1437_v47 = vpop.permute.xlu0 %1436 }
 0x457   :  { %1443 = vst.msk [vmem:[#allocation2] sm:$0xff] %vm1442_vm12, %v1437_v47 }
 0x458   :  { %v819_v12 = vpop.permute.xlu1 %818 }
 0x45a   :  { %v664_v46 = vpop.permute.xlu0 %663 }
 0x45b   :  { %669 = vst.msk [vmem:[#allocation2 + $0x8] sm:$0xff] %vm667_vm7, %v664_v46 }
 0x45c   :  { %824 = vst.msk [vmem:[#allocation2 + $0x8] sm:$0xff] %vm822_vm8, %v819_v12  ;;  %v1129_v9 = vpop.permute.xlu1 %1128 }
 0x45e   :  { %v974_v25 = vpop.permute.xlu0 %973  ;;  %v1445_v10 = vld [vmem:[#allocation2] sm:$0xff] }
 0x45f   :  { %979 = vst.msk [vmem:[#allocation2 + $0x8] sm:$0xff] %vm977_vm9, %v974_v25  ;;  %3205 = vmatmul.mubr.msk.f32.vlgmr.msra.gmra.mrb[8].mxu1 %vm1489_vm13, %v1445_v10  ;;  %3207 = vmatmul.mubr.msk.f32.vlgmr.msra.gmra.mrb[12].mxu0 %vm1489_vm13, %v1445_v10 }
 0x460   :  { %1134 = vst.msk [vmem:[#allocation2 + $0x8] sm:$0xff] %vm1132_vm10, %v1129_v9  ;;  %3593 = vmatpush3.bf16.msra.mxu1 %v4497_v60  ;;  %1566 = vmatprep.mubr.f32.mxu1 %v4010_v1  ;;  %v1439_v30 = vpop.permute.xlu1 %1438 }
 0x461   :  { %3595 = vmatprep.subr.bf16.mxu1 %v3594_v50  ;;  %1643 = vmatprep.mubr.f32.mxu0 %v4010_v1 }
 0x462   :  { %v1284_v45 = vpop.permute.xlu0 %1283 }
 0x463   :  { %1289 = vst.msk [vmem:[#allocation2 + $0x8] sm:$0xff] %vm1287_vm11, %v1284_v45  ;;  %v4615_v45 = vld [vmem:[%s4911_s1] sm:$0xff]  ;;  %s4040_s1 = smov 64  }
 0x464   :  { %1444 = vst.msk [vmem:[#allocation2 + $0x8] sm:$0xff] %vm1442_vm12, %v1439_v30  ;;  %3597 = vmatpush3.bf16.msra.mxu1 %v3594_v50 }
 0x465   :  { %3599 = vmatprep.subr.bf16.mxu1 %v3598_v61 }
 0x468   :  { %3601 = vmatpush3.bf16.msra.mxu1 %v3598_v61 }
 0x469   :  { %3603 = vmatprep.subr.bf16.mxu1 %v3602_v6 }
 0x46b   :  { %v1446_v58 = vld [vmem:[#allocation2 + $0x8] sm:$0xff] }
 0x46c   :  { %3206 = vmatmul.mubr.msk.f32.gmra.mrb[10].mxu1 %vm1489_vm13, %v1446_v58  ;;  %v3607_v11 = vpack.c.bf16 %v1446_v58, %v1445_v10  ;;  %3208 = vmatmul.mubr.msk.f32.gmra.mrb[14].mxu0 %vm1489_vm13, %v1446_v58 }
 0x46d   :  { %3605 = vmatpush3.bf16.msra.mxu1 %v3602_v6  ;;  %3423 = vmatprep.mubr.msk.f32.mxu1 %vm1489_vm13, %v1445_v10 }
 0x46e   :  { %3609 = vmatpush3.bf16.xpose.msk.msra.mxu0 %vm4541_vm14, %v3607_v11  ;;  %3430 = vmatprep.mubr.msk.f32.mxu0 %vm4009_vm0, %v4010_v1 }
 0x470   :  { %3424 = vmatmul.mubr.msk.f32.vlgmr.msra.gmra.mrb[12].mxu1 %vm1489_vm13, %v1446_v58 }
 0x475   :  { %3431 = vmatmul.mubr.msk.f32.vlgmr.msra.gmra.mrb[16].mxu0 %vm1489_vm13, %v1487_v38 }
 0x532   :  { %v4557_v39 = vpop.f32.mrb[8].mxu1  ;;  %v4559_v40 = vpop.f32.mrb[12].mxu0 }
 0x533   :  { %v4561_v56 = vpop.f32.mrb[9].mxu1  ;;  %v4563_v55 = vpop.f32.mrb[13].mxu0 }
 0x53f   :  { %v4565_v60 = vpop.f32.mrb[10].mxu1  ;;  %v4567_v48 = vpop.f32.mrb[14].mxu0 }
 0x540   :  { %v3781_v63 = vpack.i.bf16 %v4565_v60, %v4557_v39  ;;  %v4573_v57 = vpack.c.bf16 %v4565_v60, %v4557_v39  ;;  %v3791_v36 = vpack.i.bf16 %v4567_v48, %v4559_v40  ;;  %v4579_v8 = vpack.c.bf16 %v4567_v48, %v4559_v40  ;;  %v4581_v49 = vpop.f32.mrb[11].mxu1  ;;  %v4583_v16 = vpop.f32.mrb[15].mxu0  ;;  %v2840_v40 = vld [vmem:[%s4918_s8 + $0x10] sm:$0xff] }
 0x541   :  { %v3786_v17 = vpack.i.bf16 %v4581_v49, %v4561_v56  ;;  %v4589_v53 = vpack.c.bf16 %v4581_v49, %v4561_v56  ;;  %v3796_v59 = vpack.i.bf16 %v4583_v16, %v4563_v55  ;;  %v4595_v34 = vpack.c.bf16 %v4583_v16, %v4563_v55  ;;  %v2842_v55 = vld [vmem:[%s4918_s8 + $0x20] sm:$0xff]  ;;  %v2843_v16 = vld [vmem:[%s4918_s8 + $0x28] sm:$0xff] }
 0x543   :  { %v3425_v7 = vpop.f32.mrb[12].mxu1 }
 0x544   :  { %1847 = vperm.xlu1 %3767, %v3425_v7   ;;  %v1716_v20 = vpop.f32.mrb[13].mxu1 }
 0x545   :  { %1843 = vperm.xlu0 %3768, %v1716_v20  }
 0x548   :  { %3769 = vset.pattern.permute.xlu1 %v4033_v31  ;;  %v4597_v51 = vpop.f32.mrb[16].mxu0 }
 0x549   :  { %1800 = vperm.xlu1 %3769, %v1716_v20   ;;  %3770 = vset.pattern.permute.xlu0 %v4033_v31  ;;  %v3432_v27 = vpop.f32.mrb[17].mxu0  ;;  %v1853_v43 = vrot.slane %v4597_v51, %v370_v23  ;;  %v1811_v52 = vrot.slane %v4597_v51, %v4142_v24  ;;  %v2065_v30 = vrot.slane %v4597_v51, %v525_v29 }
 0x54a   :  { %1805 = vperm.xlu0 %3770, %v3425_v7   ;;  %v2190_v62 = vrot.slane %v4597_v51, %v680_v32 }
 0x54d   :  { %3771 = vset.pattern.permute.xlu1 %v4034_v19 }
 0x54e   :  { %2055 = vperm.xlu1 %3771, %v1716_v20   ;;  %3773 = vset.pattern.permute.xlu0 %v4035_v3 }
 0x54f   :  { %2180 = vperm.xlu0 %3773, %v1716_v20  }
 0x552   :  { %2059 = vperm.xlu1 %3771, %v3425_v7  }
 0x553   :  { %3775 = vset.pattern.permute.xlu0 %v4036_v37 }
 0x554   :  { %2317 = vperm.xlu0 %3775, %v3425_v7  }
 0x556   :  { %3772 = vset.pattern.permute.xlu1 %v4035_v3 }
 0x557   :  { %2184 = vperm.xlu1 %3772, %v3425_v7  }
 0x558   :  { %3778 = vset.pattern.permute.xlu0 %v4037_v35 }
 0x559   :  { %2571 = vperm.xlu0 %3778, %v1716_v20  }
 0x55b   :  { %3774 = vset.pattern.permute.xlu1 %v4036_v37 }
 0x55c   :  { %2313 = vperm.xlu1 %3774, %v1716_v20  }
 0x55d   :  { %3780 = vset.pattern.permute.xlu0 %v4038_v26 }
 0x55e   :  { %2700 = vperm.xlu0 %3780, %v3425_v7  }
 0x560   :  { %3776 = vset.pattern.permute.xlu1 %v4039_v42 }
 0x561   :  { %2438 = vperm.xlu1 %3776, %v1716_v20  }
 0x562   :  { %3802 = vset.pattern.permute.xlu0 %v4036_v37 }
 0x565   :  { %2442 = vperm.xlu1 %3776, %v3425_v7  }
 0x569   :  { %3777 = vset.pattern.permute.xlu1 %v4037_v35 }
 0x56a   :  { %2575 = vperm.xlu1 %3777, %v3425_v7  }
 0x56e   :  { %3779 = vset.pattern.permute.xlu1 %v4038_v26 }
 0x56f   :  { %2696 = vperm.xlu1 %3779, %v1716_v20  }
 0x573   :  { %3801 = vset.pattern.permute.xlu1 %v4036_v37 }
 0x5c3   :  { %v1848_v28 = vpop.permute.xlu1 %1847 }
 0x5c4   :  { %v1855_v21 = vadd.f32 %v1853_v43, %v1848_v28  ;;  %v1844_v44 = vpop.permute.xlu0 %1843  ;;  %v2323_v28 = vrot.slane %v4597_v51, %v835_v41 }
 0x5c5   :  { %v1854_v47 = vadd.f32 %v1853_v43, %v1844_v44 }
 0x5c6   :  { %v1857_v12 = vmul.f32 0.2, %v1855_v21 }
 0x5c7   :  { %v1856_v46 = vmul.f32 0.2, %v1854_v47 }
 0x5c8   :  { %v1859_v13 = vmax.f32 %v1855_v21, %v1857_v12  ;;  %v1801_v9 = vpop.permute.xlu1 %1800 }
 0x5c9   :  { %v1858_v50 = vmax.f32 %v1854_v47, %v1856_v46  ;;  %v1812_v25 = vadd.f32 %v1811_v52, %v1801_v9  ;;  %v1806_v10 = vpop.permute.xlu0 %1805 }
 0x5ca   :  { %v1813_v33 = vadd.f32 %v1811_v52, %v1806_v10  ;;  %v4610_v23 = vadd.f32 %v4607_v18, %v1859_v13 }
 0x5cb   :  { %v1814_v61 = vmul.f32 0.2, %v1812_v25  ;;  %v4618_v4 = vadd.f32 %v4615_v45, %v1858_v50 }
 0x5cc   :  { %v1815_v5 = vmul.f32 0.2, %v1813_v33  ;;  %v1865_v6 = vsel %vm236_vm3, %v4610_v23, -inf }
 0x5cd   :  { %v1816_v58 = vmax.f32 %v1812_v25, %v1814_v61  ;;  %v2056_v11 = vpop.permute.xlu1 %2055  ;;  %1866 = vmax.xlane.f32.xlu0 %v1865_v6  ;;  %v1862_v38 = vsel %vm236_vm3, %v4618_v4, -inf }
 0x5ce   :  { %v1817_v7 = vmax.f32 %v1813_v33, %v1815_v5  ;;  %v2066_v20 = vadd.f32 %v2065_v30, %v2056_v11  ;;  %1863 = vmax.xlane.f32.xlu1 %v1862_v38  ;;  %v2181_v31 = vpop.permute.xlu0 %2180  ;;  %v2581_v11 = vrot.slane %v4597_v51, %v1145_v2 }
 0x5cf   :  { %v2191_v27 = vadd.f32 %v2190_v62, %v2181_v31  ;;  %v4631_v29 = vadd.f32 %v4615_v45, %v1816_v58 }
 0x5d0   :  { %v2068_v19 = vmul.f32 0.2, %v2066_v20  ;;  %v4634_v3 = vadd.f32 %v4607_v18, %v1817_v7 }
 0x5d1   :  { %v2193_v37 = vmul.f32 0.2, %v2191_v27  ;;  %v2060_v35 = vpop.permute.xlu1 %2059  ;;  %v1820_v26 = vsel %vm236_vm3, %v4631_v29, -inf }
 0x5d2   :  { %v2070_v42 = vmax.f32 %v2066_v20, %v2068_v19  ;;  %v2067_v43 = vadd.f32 %v2065_v30, %v2060_v35  ;;  %1821 = vmax.xlane.f32.xlu1 %v1820_v26  ;;  %v1823_v32 = vsel %vm236_vm3, %v4634_v3, -inf }
 0x5d3   :  { %v2195_v21 = vmax.f32 %v2191_v27, %v2193_v37  ;;  %1824 = vmax.xlane.f32.xlu0 %v1823_v32  ;;  %v2318_v44 = vpop.permute.xlu0 %2317  ;;  %v2448_v27 = vrot.slane %v4597_v51, %v990_v54  ;;  %v2706_v54 = vrot.slane %v4597_v51, %v1300_v14 }
 0x5d4   :  { %v2069_v47 = vmul.f32 0.2, %v2067_v43  ;;  %v2325_v12 = vadd.f32 %v2323_v28, %v2318_v44  ;;  %v4644_v46 = vadd.f32 %v4615_v45, %v2070_v42 }
 0x5d5   :  { %v4649_v50 = vadd.f32 %v4615_v45, %v2195_v21 }
 0x5d6   :  { %v2071_v52 = vmax.f32 %v2067_v43, %v2069_v47  ;;  %v2185_v13 = vpop.permute.xlu1 %2184  ;;  %v2074_v9 = vsel %vm236_vm3, %v4644_v46, -inf  ;;  %v2327_v25 = vmul.f32 0.2, %v2325_v12 }
 0x5d7   :  { %v2192_v10 = vadd.f32 %v2190_v62, %v2185_v13  ;;  %2075 = vmax.xlane.f32.xlu1 %v2074_v9  ;;  %v2199_v30 = vsel %vm236_vm3, %v4649_v50, -inf }
 0x5d8   :  { %v4652_v41 = vadd.f32 %v4607_v18, %v2071_v52  ;;  %v2572_v61 = vpop.permute.xlu0 %2571  ;;  %v2329_v6 = vmax.f32 %v2325_v12, %v2327_v25 }
 0x5d9   :  { %v2194_v33 = vmul.f32 0.2, %v2192_v10  ;;  %v2582_v7 = vadd.f32 %v2581_v11, %v2572_v61 }
 0x5da   :  { %v2077_v5 = vsel %vm236_vm3, %v4652_v41, -inf  ;;  %v4670_v37 = vadd.f32 %v4607_v18, %v2329_v6 }
 0x5db   :  { %v2196_v58 = vmax.f32 %v2192_v10, %v2194_v33  ;;  %v2314_v38 = vpop.permute.xlu1 %2313  ;;  %2078 = vmax.xlane.f32.xlu0 %v2077_v5  ;;  %2200 = vmax.xlane.f32.xlu1 %v2199_v30  ;;  %v2584_v26 = vmul.f32 0.2, %v2582_v7 }
 0x5dc   :  { %v2324_v62 = vadd.f32 %v2323_v28, %v2314_v38  ;;  %v2335_v21 = vsel %vm236_vm3, %v4670_v37, -inf }
 0x5dd   :  { %v4662_v20 = vadd.f32 %v4607_v18, %v2196_v58  ;;  %v2701_v32 = vpop.permute.xlu0 %2700  ;;  %v2586_v12 = vmax.f32 %v2582_v7, %v2584_v26 }
 0x5de   :  { %v2326_v31 = vmul.f32 0.2, %v2324_v62  ;;  %v2708_v9 = vadd.f32 %v2706_v54, %v2701_v32 }
 0x5df   :  { %v2202_v19 = vsel %vm236_vm3, %v4662_v20, -inf  ;;  %v4688_v14 = vadd.f32 %v4615_v45, %v2586_v12 }
 0x5e0   :  { %v2328_v2 = vmax.f32 %v2324_v62, %v2326_v31  ;;  %v2439_v35 = vpop.permute.xlu1 %2438  ;;  %2203 = vmax.xlane.f32.xlu0 %v2202_v19  ;;  %v2710_v51 = vmul.f32 0.2, %v2708_v9 }
 0x5e1   :  { %v2449_v42 = vadd.f32 %v2448_v27, %v2439_v35  ;;  %v2590_v38 = vsel %vm236_vm3, %v4688_v14, -inf }
 0x5e2   :  { %v4673_v43 = vadd.f32 %v4615_v45, %v2328_v2  ;;  %v2712_v62 = vmax.f32 %v2708_v9, %v2710_v51 }
 0x5e3   :  { %v2451_v28 = vmul.f32 0.2, %v2449_v42 }
 0x5e4   :  { %v2443_v44 = vpop.permute.xlu1 %2442  ;;  %2336 = vmax.xlane.f32.xlu0 %v2335_v21  ;;  %v2332_v47 = vsel %vm236_vm3, %v4673_v43, -inf  ;;  %v4703_v35 = vadd.f32 %v4607_v18, %v2712_v62 }
 0x5e5   :  { %v2453_v52 = vmax.f32 %v2449_v42, %v2451_v28  ;;  %v2450_v13 = vadd.f32 %v2448_v27, %v2443_v44  ;;  %2333 = vmax.xlane.f32.xlu1 %v2332_v47 }
 0x5e6   :  { %v2718_v32 = vsel %vm236_vm3, %v4703_v35, -inf }
 0x5e7   :  { %v2452_v25 = vmul.f32 0.2, %v2450_v13  ;;  %v4683_v10 = vadd.f32 %v4615_v45, %v2453_v52 }
 0x5e9   :  { %v2454_v33 = vmax.f32 %v2450_v13, %v2452_v25  ;;  %v2576_v61 = vpop.permute.xlu1 %2575  ;;  %v2457_v22 = vsel %vm236_vm3, %v4683_v10, -inf }
 0x5ea   :  { %v2583_v5 = vadd.f32 %v2581_v11, %v2576_v61  ;;  %2458 = vmax.xlane.f32.xlu1 %v2457_v22 }
 0x5eb   :  { %v4691_v30 = vadd.f32 %v4607_v18, %v2454_v33 }
 0x5ec   :  { %v2585_v6 = vmul.f32 0.2, %v2583_v5 }
 0x5ed   :  { %v2460_v58 = vsel %vm236_vm3, %v4691_v30, -inf }
 0x5ee   :  { %v2587_v7 = vmax.f32 %v2583_v5, %v2585_v6  ;;  %v2697_v31 = vpop.permute.xlu1 %2696  ;;  %2461 = vmax.xlane.f32.xlu0 %v2460_v58  ;;  %2591 = vmax.xlane.f32.xlu1 %v2590_v38 }
 0x5ef   :  { %v2707_v27 = vadd.f32 %v2706_v54, %v2697_v31 }
 0x5f0   :  { %v4698_v19 = vadd.f32 %v4607_v18, %v2587_v7 }
 0x5f1   :  { %v2709_v11 = vmul.f32 0.2, %v2707_v27 }
 0x5f2   :  { %v2593_v2 = vsel %vm236_vm3, %v4698_v19, -inf }
 0x5f3   :  { %v2711_v26 = vmax.f32 %v2707_v27, %v2709_v11  ;;  %2594 = vmax.xlane.f32.xlu0 %v2593_v2 }
 0x5f5   :  { %v4706_v42 = vadd.f32 %v4615_v45, %v2711_v26 }
 0x5f7   :  { %2719 = vmax.xlane.f32.xlu0 %v2718_v32  ;;  %v2715_v28 = vsel %vm236_vm3, %v4706_v42, -inf }
 0x5f8   :  { %2716 = vmax.xlane.f32.xlu1 %v2715_v28 }
 0x65a   :  { %v1867_v21 = vpop.xlane.xlu0 %1866 }
 0x65b   :  { %v1869_v54 = vsub.f32 %v4610_v23, %v1867_v21  ;;  %v1864_v44 = vpop.xlane.xlu1 %1863 }
 0x65c   :  { %v1868_v47 = vsub.f32 %v4618_v4, %v1864_v44 }
 0x65d   :  { %v1872_v12 = vmul.f32 1.442695, %v1869_v54 }
 0x65e   :  { %v1870_v52 = vmul.f32 1.442695, %v1868_v47 }
 0x65f   :  { %3899 = vpow2.f32 %v1872_v12  ;;  %v1822_v6 = vpop.xlane.xlu1 %1821 }
 0x660   :  { %3901 = vpow2.f32 %v1870_v52  ;;  %v1825_v13 = vpop.xlane.xlu0 %1824  ;;  %v1826_v60 = vsub.f32 %v4631_v29, %v1822_v6 }
 0x661   :  { %v1827_v9 = vsub.f32 %v4634_v3, %v1825_v13 }
 0x663   :  { %v1830_v25 = vmul.f32 1.442695, %v1827_v9 }
 0x664   :  { %v2076_v31 = vpop.xlane.xlu1 %2075 }
 0x665   :  { %3903 = vpow2.f32 %v1830_v25  ;;  %v1828_v25 = vmul.f32 1.442695, %v1826_v60  ;;  %v2844_v60 = vld [vmem:[%s4918_s8 + $0x30] sm:$0xff] }
 0x668   :  { %v2079_v33 = vpop.xlane.xlu0 %2078  ;;  %v2201_v26 = vpop.xlane.xlu1 %2200 }
 0x669   :  { %v4715_v61 = vpop.eup %3899  ;;  %v2081_v22 = vsub.f32 %v4652_v41, %v2079_v33  ;;  %v2205_v32 = vsub.f32 %v4649_v50, %v2201_v26  ;;  %v2080_v33 = vsub.f32 %v4644_v46, %v2076_v31 }
 0x66a   :  { %v4718_v51 = vpop.eup %3901  ;;  %v1877_v23 = vsel %vm236_vm3, %v4715_v61, 0.0 }
 0x66b   :  { %v2084_v4 = vmul.f32 1.442695, %v2081_v22  ;;  %1878 = vadd.xlane.f32.xlu0 %v1877_v23  ;;  %v1874_v5 = vsel %vm236_vm3, %v4718_v51, 0.0  ;;  %v2207_v12 = vmul.f32 1.442695, %v2205_v32 }
 0x66c   :  { %1875 = vadd.xlane.f32.xlu1 %v1874_v5  ;;  %v2082_v5 = vmul.f32 1.442695, %v2080_v33 }
 0x66d   :  { %v2204_v3 = vpop.xlane.xlu0 %2203  ;;  %3905 = vpow2.f32 %v2084_v4 }
 0x66e   :  { %v2206_v58 = vsub.f32 %v4662_v20, %v2204_v3 }
 0x66f   :  { %v4725_v38 = vpop.eup %3903 }
 0x670   :  { %v2209_v62 = vmul.f32 1.442695, %v2206_v58  ;;  %v1835_v41 = vsel %vm236_vm3, %v4725_v38, 0.0 }
 0x671   :  { %1836 = vadd.xlane.f32.xlu0 %v1835_v41  ;;  %v2337_v7 = vpop.xlane.xlu0 %2336 }
 0x672   :  { %3907 = vpow2.f32 %v2209_v62  ;;  %v2339_v27 = vsub.f32 %v4670_v37, %v2337_v7  ;;  %v2334_v54 = vpop.xlane.xlu1 %2333 }
 0x673   :  { %v2338_v50 = vsub.f32 %v4673_v43, %v2334_v54 }
 0x674   :  { %v2342_v11 = vmul.f32 1.442695, %v2339_v27 }
 0x675   :  { %v2340_v13 = vmul.f32 1.442695, %v2338_v50 }
 0x676   :  { %3909 = vpow2.f32 %v2342_v11 }
 0x677   :  { %v4730_v2 = vpop.eup %3905  ;;  %v2459_v4 = vpop.xlane.xlu1 %2458 }
 0x678   :  { %v2089_v20 = vsel %vm236_vm3, %v4730_v2, 0.0  ;;  %v2463_v41 = vsub.f32 %v4683_v10, %v2459_v4 }
 0x679   :  { %2090 = vadd.xlane.f32.xlu0 %v2089_v20 }
 0x67a   :  { %v2465_v11 = vmul.f32 1.442695, %v2463_v41 }
 0x67b   :  { %v2462_v28 = vpop.xlane.xlu0 %2461  ;;  %v2592_v62 = vpop.xlane.xlu1 %2591 }
 0x67c   :  { %v4735_v21 = vpop.eup %3907  ;;  %v2464_v44 = vsub.f32 %v4691_v30, %v2462_v28 }
 0x67d   :  { %3782 = vrot.lane.b32.xlu1 %v3781_v63, %s4040_s1  ;;  %v2214_v37 = vsel %vm236_vm3, %v4735_v21, 0.0 }
 0x67e   :  { %v2467_v47 = vmul.f32 1.442695, %v2464_v44  ;;  %2215 = vadd.xlane.f32.xlu0 %v2214_v37 }
 0x680   :  { %v4745_v52 = vpop.eup %3909  ;;  %3911 = vpow2.f32 %v2467_v47  ;;  %v2595_v43 = vpop.xlane.xlu0 %2594 }
 0x681   :  { %v2347_v30 = vsel %vm236_vm3, %v4745_v52, 0.0  ;;  %3913 = vpow2.f32 %v2207_v12  ;;  %v2597_v29 = vsub.f32 %v4698_v19, %v2595_v43  ;;  %v2596_v12 = vsub.f32 %v4688_v14, %v2592_v62  ;;  %v2838_v14 = vld [vmem:[%s4918_s8] sm:$0xff] }
 0x682   :  { %2348 = vadd.xlane.f32.xlu0 %v2347_v30  ;;  %3915 = vpow2.f32 %v2340_v13  ;;  %v2839_v30 = vld [vmem:[%s4918_s8 + $0x8] sm:$0xff] }
 0x683   :  { %3917 = vpow2.f32 %v1828_v25  ;;  %v2600_v58 = vmul.f32 1.442695, %v2597_v29  ;;  %v2598_v56 = vmul.f32 1.442695, %v2596_v12  ;;  %v3642_v48 = vpack.c.bf16 %v2839_v30, %v2838_v14 }
 0x684   :  { %v2720_v6 = vpop.xlane.xlu0 %2719  ;;  %3919 = vpow2.f32 %v2082_v5 }
 0x685   :  { %v2722_v46 = vsub.f32 %v4703_v35, %v2720_v6  ;;  %3921 = vpow2.f32 %v2600_v58  ;;  %v2717_v31 = vpop.xlane.xlu1 %2716  ;;  %3643 = vmatprep.subr.bf16.mxu1 %v3642_v48 }
 0x686   :  { %v2721_v19 = vsub.f32 %v4706_v42, %v2717_v31  ;;  %3645 = vmatpush3.bf16.msra.mxu1 %v3642_v48 }
 0x687   :  { %v2725_v7 = vmul.f32 1.442695, %v2722_v46 }
 0x688   :  { %v2723_v35 = vmul.f32 1.442695, %v2721_v19 }
 0x689   :  { %3923 = vpow2.f32 %v2725_v7 }
 0x68a   :  { %v4749_v39 = vpop.eup %3911  ;;  %3925 = vpow2.f32 %v2465_v11 }
 0x68b   :  { %v2472_v63 = vsel %vm236_vm3, %v4749_v39, 0.0  ;;  %v4754_v9 = vpop.eup %3913  ;;  %3927 = vpow2.f32 %v2723_v35 }
 0x68c   :  { %2473 = vadd.xlane.f32.xlu0 %v2472_v63  ;;  %v2211_v22 = vsel %vm236_vm3, %v4754_v9, 0.0  ;;  %v4759_v23 = vpop.eup %3915  ;;  %3929 = vpow2.f32 %v2598_v56  ;;  %v2845_v63 = vld [vmem:[%s4918_s8 + $0x38] sm:$0xff] }
 0x68d   :  { %v2344_v3 = vsel %vm236_vm3, %v4759_v23, 0.0  ;;  %v4766_v27 = vpop.eup %3917  ;;  %v3654_v43 = vpack.c.bf16 %v2845_v63, %v2844_v60 }
 0x68e   :  { %v1832_v26 = vsel %vm236_vm3, %v4766_v27, 0.0  ;;  %v4771_v20 = vpop.eup %3919 }
 0x68f   :  { %v2086_v10 = vsel %vm236_vm3, %v4771_v20, 0.0  ;;  %v4775_v32 = vpop.eup %3921 }
 0x690   :  { %2212 = vadd.xlane.f32.xlu0 %v2211_v22  ;;  %v2605_v28 = vsel %vm236_vm3, %v4775_v32, 0.0 }
 0x693   :  { %v4779_v54 = vpop.eup %3923 }
 0x694   :  { %2345 = vadd.xlane.f32.xlu0 %v2344_v3  ;;  %v2730_v42 = vsel %vm236_vm3, %v4779_v54, 0.0  ;;  %v4787_v44 = vpop.eup %3925 }
 0x695   :  { %v2469_v37 = vsel %vm236_vm3, %v4787_v44, 0.0  ;;  %v4791_v47 = vpop.eup %3927 }
 0x696   :  { %v2727_v50 = vsel %vm236_vm3, %v4791_v47, 0.0  ;;  %v4796_v49 = vpop.eup %3929 }
 0x6a1   :  { %1833 = vadd.xlane.f32.xlu1 %v1832_v26 }
 0x6a5   :  { %2087 = vadd.xlane.f32.xlu1 %v2086_v10 }
 0x6a9   :  { %2606 = vadd.xlane.f32.xlu1 %v2605_v28 }
 0x6aa   :  { %3787 = vrot.lane.b32.xlu0 %v3786_v17, %s4040_s1  ;;  %v2602_v17 = vsel %vm236_vm3, %v4796_v49, 0.0 }
 0x6ad   :  { %2731 = vadd.xlane.f32.xlu1 %v2730_v42 }
 0x6b1   :  { %2470 = vadd.xlane.f32.xlu1 %v2469_v37 }
 0x6b5   :  { %2728 = vadd.xlane.f32.xlu1 %v2727_v50 }
 0x6c6   :  { %3792 = vrot.lane.b32.xlu1 %v3791_v36, %s4040_s1  ;;  %v2841_v36 = vld [vmem:[%s4918_s8 + $0x18] sm:$0xff] }
 0x6c7   :  { %v3646_v13 = vpack.c.bf16 %v2841_v36, %v2840_v40 }
 0x6c9   :  { %2603 = vadd.xlane.f32.xlu0 %v2602_v17  ;;  %3647 = vmatprep.subr.bf16.mxu1 %v3646_v13 }
 0x6ca   :  { %3649 = vmatpush3.bf16.msra.mxu1 %v3646_v13 }
 0x6df   :  { %3797 = vrot.lane.b32.xlu0 %v3796_v59, %s4040_s1  ;;  %v3650_v59 = vpack.c.bf16 %v2843_v16, %v2842_v55 }
 0x6e1   :  { %3651 = vmatprep.subr.bf16.mxu1 %v3650_v59 }
 0x6e2   :  { %3653 = vmatpush3.bf16.msra.mxu1 %v3650_v59 }
 0x6e3   :  { %3655 = vmatprep.subr.bf16.mxu1 %v3654_v43 }
 0x6e6   :  { %3657 = vmatpush3.bf16.msra.mxu1 %v3654_v43 }
 0x6e7   :  { %3658 = vmatprep.subr.bf16.mxu1 %v4008_v0 }
 0x6f8   :  { %v1879_v25 = vpop.xlane.xlu0 %1878 }
 0x6f9   :  { %3931 = vrcp.f32 %v1879_v25  ;;  %v1876_v33 = vpop.xlane.xlu1 %1875 }
 0x6fa   :  { %3933 = vrcp.f32 %v1876_v33 }
 0x6fd   :  { %v3783_v22 = vpop.permute.xlu1 %3782 }
 0x6fe   :  { %v3785_v4 = vunpack.i.h.bf16 %v3783_v22  ;;  %v3784_v5 = vunpack.i.l.bf16 %v3783_v22  ;;  %v1837_v0 = vpop.xlane.xlu0 %1836 }
 0x6ff   :  { %3935 = vrcp.f32 %v1837_v0 }
 0x700   :  { %v3610_v29 = vpack.c.bf16 %v3785_v4, %v3784_v5 }
 0x702   :  { %3611 = vmatprep.subr.bf16.mxu0 %v3610_v29 }
 0x703   :  { %v3932_v6 = vpop.eup %3931  ;;  %3613 = vmatpush3.bf16.msra.mxu0 %v3610_v29 }
 0x704   :  { %v3934_v3 = vpop.eup %3933  ;;  %3615 = vmatprep.subr.bf16.mxu0 %v4573_v57  ;;  %v1883_v46 = vmul.f32 %v3932_v6, %v4715_v61 }
 0x705   :  { %v1882_v58 = vmul.f32 %v3934_v3, %v4718_v51 }
 0x706   :  { %v2091_v62 = vpop.xlane.xlu0 %2090 }
 0x707   :  { %3437 = vmatprep.mubr.msk.f32.mxu0 %vm236_vm3, %v1882_v58 }
 0x708   :  { %3438 = vmatmul.mubr.msk.f32.vlgmr.msra.gmra.mrb[18].mxu0 %vm236_vm3, %v1883_v46 }
 0x709   :  { %3617 = vmatpush3.bf16.msra.mxu0 %v4573_v57  ;;  %v3936_v10 = vpop.eup %3935 }
 0x70a   :  { %3619 = vmatprep.subr.bf16.mxu0 %v4589_v53  ;;  %v1841_v50 = vmul.f32 %v3936_v10, %v4725_v38 }
 0x70b   :  { %v2216_v41 = vpop.xlane.xlu0 %2215 }
 0x70f   :  { %v2349_v7 = vpop.xlane.xlu0 %2348 }
 0x719   :  { %v2474_v31 = vpop.xlane.xlu0 %2473 }
 0x71d   :  { %v2213_v11 = vpop.xlane.xlu0 %2212 }
 0x721   :  { %v2346_v51 = vpop.xlane.xlu0 %2345 }
 0x725   :  { %v3788_v61 = vpop.permute.xlu0 %3787 }
 0x726   :  { %v3790_v28 = vunpack.i.h.bf16 %v3788_v61  ;;  %v3789_v42 = vunpack.i.l.bf16 %v3788_v61 }
 0x728   :  { %v3622_v17 = vpack.c.bf16 %v3790_v28, %v3789_v42 }
 0x72e   :  { %v1834_v19 = vpop.xlane.xlu1 %1833 }
 0x72f   :  { %3937 = vrcp.f32 %v1834_v19 }
 0x732   :  { %v2088_v26 = vpop.xlane.xlu1 %2087 }
 0x733   :  { %3939 = vrcp.f32 %v2088_v26 }
 0x734   :  { %3941 = vrcp.f32 %v2091_v62 }
 0x735   :  { %3943 = vrcp.f32 %v2213_v11 }
 0x736   :  { %v2607_v35 = vpop.xlane.xlu1 %2606  ;;  %3945 = vrcp.f32 %v2216_v41 }
 0x737   :  { %3947 = vrcp.f32 %v2346_v51 }
 0x738   :  { %3949 = vrcp.f32 %v2349_v7 }
 0x739   :  { %v3938_v57 = vpop.eup %3937 }
 0x73a   :  { %v2732_v37 = vpop.xlane.xlu1 %2731  ;;  %v1840_v12 = vmul.f32 %v3938_v57, %v4766_v27 }
 0x73c   :  { %3444 = vmatprep.mubr.msk.f32.mxu0 %vm236_vm3, %v1840_v12 }
 0x73d   :  { %v3940_v56 = vpop.eup %3939  ;;  %3445 = vmatmul.mubr.msk.f32.vlgmr.msra.gmra.mrb[18].mxu0 %vm236_vm3, %v1841_v50 }
 0x73e   :  { %3621 = vmatpush3.bf16.msra.mxu0 %v4589_v53  ;;  %v2471_v14 = vpop.xlane.xlu1 %2470  ;;  %v2094_v30 = vmul.f32 %v3940_v56, %v4771_v20  ;;  %v3942_v40 = vpop.eup %3941 }
 0x73f   :  { %3623 = vmatprep.subr.bf16.mxu0 %v3622_v17  ;;  %v3944_v27 = vpop.eup %3943  ;;  %v2095_v38 = vmul.f32 %v3942_v40, %v4730_v2  ;;  %3951 = vrcp.f32 %v2471_v14 }
 0x740   :  { %3451 = vmatprep.mubr.msk.f32.mxu0 %vm236_vm3, %v2094_v30  ;;  %v2219_v36 = vmul.f32 %v3944_v27, %v4754_v9  ;;  %v3946_v53 = vpop.eup %3945  ;;  %3953 = vrcp.f32 %v2474_v31 }
 0x741   :  { %v3948_v20 = vpop.eup %3947  ;;  %v2220_v59 = vmul.f32 %v3946_v53, %v4735_v21  ;;  %3955 = vrcp.f32 %v2607_v35 }
 0x742   :  { %v2729_v48 = vpop.xlane.xlu1 %2728  ;;  %v2352_v2 = vmul.f32 %v3948_v20, %v4759_v23  ;;  %v3950_v9 = vpop.eup %3949 }
 0x743   :  { %v2353_v43 = vmul.f32 %v3950_v9, %v4745_v52  ;;  %3957 = vrcp.f32 %v2729_v48 }
 0x745   :  { %3452 = vmatmul.mubr.msk.f32.vlgmr.msra.gmra.mrb[18].mxu0 %vm236_vm3, %v2095_v38 }
 0x746   :  { %3625 = vmatpush3.bf16.msra.mxu0 %v3622_v17  ;;  %v3793_v13 = vpop.permute.xlu1 %3792  ;;  %3458 = vmatprep.mubr.msk.f32.mxu0 %vm236_vm3, %v2219_v36 }
 0x747   :  { %3627 = vmatprep.subr.bf16.mxu0 %v4579_v8  ;;  %v3795_v55 = vunpack.i.h.bf16 %v3793_v13  ;;  %v3794_v16 = vunpack.i.l.bf16 %v3793_v13 }
 0x749   :  { %v3630_v60 = vpack.c.bf16 %v3795_v55, %v3794_v16  ;;  %v3952_v63 = vpop.eup %3951 }
 0x74a   :  { %v2477_v25 = vmul.f32 %v3952_v63, %v4787_v44 }
 0x74d   :  { %3459 = vmatmul.mubr.msk.f32.vlgmr.msra.gmra.mrb[18].mxu0 %vm236_vm3, %v2220_v59 }
 0x74e   :  { %3629 = vmatpush3.bf16.msra.mxu0 %v4579_v8  ;;  %3465 = vmatprep.mubr.msk.f32.mxu0 %vm236_vm3, %v2352_v2  ;;  %v3954_v8 = vpop.eup %3953  ;;  %v3236_v2 = vld [vmem:[%s4920_s10] ss:$0 sm:$0xff] }
 0x74f   :  { %3631 = vmatprep.subr.bf16.mxu0 %v3630_v60  ;;  %v2478_v23 = vmul.f32 %v3954_v8, %v4749_v39  ;;  %v3956_v44 = vpop.eup %3955 }
 0x750   :  { %v3958_v5 = vpop.eup %3957  ;;  %v2611_v3 = vmul.f32 %v3956_v44, %v4775_v32 }
 0x751   :  { %v2735_v39 = vmul.f32 %v3958_v5, %v4791_v47 }
 0x755   :  { %3466 = vmatmul.mubr.msk.f32.vlgmr.msra.gmra.mrb[18].mxu0 %vm236_vm3, %v2353_v43 }
 0x756   :  { %3633 = vmatpush3.bf16.msra.mxu0 %v3630_v60  ;;  %3472 = vmatprep.mubr.msk.f32.mxu0 %vm236_vm3, %v2477_v25  ;;  %v2604_v21 = vpop.xlane.xlu0 %2603 }
 0x757   :  { %3635 = vmatprep.subr.bf16.mxu0 %v4595_v34  ;;  %3959 = vrcp.f32 %v2604_v21 }
 0x758   :  { %3961 = vrcp.f32 %v2732_v37 }
 0x75a   :  { %v3798_v33 = vpop.permute.xlu0 %3797 }
 0x75b   :  { %v3800_v22 = vunpack.i.h.bf16 %v3798_v33  ;;  %v3799_v4 = vunpack.i.l.bf16 %v3798_v33 }
 0x75d   :  { %3473 = vmatmul.mubr.msk.f32.vlgmr.msra.gmra.mrb[18].mxu0 %vm236_vm3, %v2478_v23  ;;  %v3638_v52 = vpack.c.bf16 %v3800_v22, %v3799_v4 }
 0x75e   :  { %3637 = vmatpush3.bf16.msra.mxu0 %v4595_v34 }
 0x75f   :  { %3639 = vmatprep.subr.bf16.mxu0 %v3638_v52 }
 0x761   :  { %v3960_v29 = vpop.eup %3959 }
 0x762   :  { %v2610_v6 = vmul.f32 %v3960_v29, %v4796_v49  ;;  %v3962_v58 = vpop.eup %3961  ;;  %v3230_v49 = vld [vmem:[%s4917_s7] ss:$0 sm:$0xff] }
 0x763   :  { %v2736_v34 = vmul.f32 %v3962_v58, %v4779_v54  ;;  %v2846_v54 = vld [vmem:[%s4919_s9] sm:$0x1] }
 0x764   :  { %3479 = vmatprep.mubr.msk.f32.mxu0 %vm236_vm3, %v2610_v6 }
 0x765   :  { %3480 = vmatmul.mubr.msk.f32.vlgmr.msra.gmra.mrb[18].mxu0 %vm236_vm3, %v2611_v3 }
 0x766   :  { %3641 = vmatpush3.bf16.msra.mxu0 %v3638_v52  ;;  %3486 = vmatprep.mubr.msk.f32.mxu0 %vm236_vm3, %v2735_v39 }
 0x76d   :  { %3487 = vmatmul.mubr.msk.f32.vlgmr.msra.gmra.mrb[18].mxu0 %vm236_vm3, %v2736_v34 }
 0x840   :  { %v3488_v46 = vpop.f32.mrb[18].mxu0 }
 0x841   :  { %v2829_v32 = vmul.f32 0.125, %v3488_v46  ;;  %v2817_v0 = vpop.f32.mrb[19].mxu0 }
 0x842   :  { %v2828_v62 = vmul.f32 0.125, %v2817_v0 }
 0x843   :  { %v2837_v41 = vadd.f32 %v3230_v49, %v2829_v32 }
 0x844   :  { %v2836_v47 = vadd.f32 %v3230_v49, %v2828_v62 }
 0x846   :  { %v3659_v7 = vpack.c.bf16 %v2837_v41, %v2836_v47  ;;  %3505 = vmatprep.mubr.msk.f32.mxu1 %vm1489_vm13, %v2836_v47 }
 0x847   :  { %3506 = vmatmul.mubr.msk.f32.vlgmr.msra.gmra.mrb[14].mxu1 %vm1489_vm13, %v2837_v41 }
 0x848   :  { %3661 = vmatpush3.bf16.xpose.msk.msra.mxu1 %vm4541_vm14, %v3659_v7  ;;  %3512 = vmatprep.mubr.msk.f32.mxu1 %vm4009_vm0, %v4010_v1  ;;  %vm3133_vm0 = vcmask 31744  }
 0x84f   :  { %3513 = vmatmul.mubr.msk.f32.vlgmr.msra.gmra.mrb[16].mxu1 %vm1489_vm13, %v2846_v54 }
 0x91a   :  { %v3507_v31 = vpop.f32.mrb[14].mxu1 }
 0x91b   :  { %v2920_v11 = vpop.f32.mrb[15].mxu1 }
 0x91c   :  { %v3662_v19 = vpack.c.bf16 %v3507_v31, %v2920_v11  ;;  %3004 = vperm.xlu1 %3801, %v2920_v11  }
 0x91e   :  { %3663 = vmatprep.subr.bf16.mxu1 %v3662_v19 }
 0x91f   :  { %3665 = vmatpush3.bf16.msra.mxu1 %v3662_v19 }
 0x920   :  { %3009 = vperm.xlu1 %3801, %v3507_v31  }
 0x922   :  { %v2998_v51 = vpop.f32.mrb[16].mxu1 }
 0x923   :  { %v3514_v26 = vpop.f32.mrb[17].mxu1  ;;  %v3015_v15 = vrot.slane %v2998_v51, %v4142_v24 }
 0x99b   :  { %v3005_v61 = vpop.permute.xlu1 %3004 }
 0x99c   :  { %v3016_v35 = vadd.f32 %v3015_v15, %v3005_v61 }
 0x99e   :  { %v3018_v1 = vmul.f32 0.2, %v3016_v35 }
 0x99f   :  { %v3010_v10 = vpop.permute.xlu1 %3009 }
 0x9a0   :  { %v3020_v57 = vmax.f32 %v3016_v35, %v3018_v1  ;;  %v3017_v28 = vadd.f32 %v3015_v15, %v3010_v10 }
 0x9a2   :  { %v3019_v42 = vmul.f32 0.2, %v3017_v28  ;;  %v3022_v37 = vadd.f32 %v4615_v45, %v3020_v57 }
 0x9a4   :  { %v3021_v12 = vmax.f32 %v3017_v28, %v3019_v42  ;;  %v3024_v50 = vsel %vm236_vm3, %v3022_v37, -inf }
 0x9a5   :  { %3025 = vmax.xlane.f32.xlu1 %v3024_v50 }
 0x9a6   :  { %v3023_v56 = vadd.f32 %v4607_v18, %v3021_v12 }
 0x9a8   :  { %v3027_v17 = vsel %vm236_vm3, %v3023_v56, -inf }
 0x9a9   :  { %3028 = vmax.xlane.f32.xlu0 %v3027_v17 }
 0xa32   :  { %v3026_v14 = vpop.xlane.xlu1 %3025 }
 0xa33   :  { %v3030_v24 = vsub.f32 %v3022_v37, %v3026_v14 }
 0xa35   :  { %v3032_v30 = vmul.f32 1.442695, %v3030_v24 }
 0xa36   :  { %v3029_v40 = vpop.xlane.xlu0 %3028 }
 0xa37   :  { %3963 = vpow2.f32 %v3032_v30  ;;  %v3031_v27 = vsub.f32 %v3023_v56, %v3029_v40 }
 0xa39   :  { %v3034_v48 = vmul.f32 1.442695, %v3031_v27 }
 0xa3b   :  { %3965 = vpow2.f32 %v3034_v48 }
 0xa41   :  { %v3964_v38 = vpop.eup %3963 }
 0xa42   :  { %v3036_v45 = vsel %vm236_vm3, %v3964_v38, 0.0 }
 0xa43   :  { %3037 = vadd.xlane.f32.xlu1 %v3036_v45 }
 0xa45   :  { %v3966_v36 = vpop.eup %3965 }
 0xa46   :  { %v3039_v13 = vsel %vm236_vm3, %v3966_v36, 0.0 }
 0xa47   :  { %3040 = vadd.xlane.f32.xlu0 %v3039_v13 }
 0xad0   :  { %v3038_v18 = vpop.xlane.xlu1 %3037 }
 0xad1   :  { %3967 = vrcp.f32 %v3038_v18 }
 0xad4   :  { %v3041_v53 = vpop.xlane.xlu0 %3040 }
 0xad5   :  { %3969 = vrcp.f32 %v3041_v53 }
 0xadb   :  { %v3968_v20 = vpop.eup %3967 }
 0xadc   :  { %v3044_v55 = vmul.f32 %v3968_v20, %v3964_v38 }
 0xade   :  { %3519 = vmatprep.mubr.msk.f32.mxu1 %vm236_vm3, %v3044_v55 }
 0xadf   :  { %v3970_v16 = vpop.eup %3969 }
 0xae0   :  { %v3045_v59 = vmul.f32 %v3970_v16, %v3966_v36 }
 0xae2   :  { %3520 = vmatmul.mubr.msk.f32.vlgmr.msra.gmra.mrb[18].mxu1 %vm236_vm3, %v3045_v59 }
 0xbb5   :  { %v3521_v60 = vpop.f32.mrb[18].mxu1 }
 0xbb6   :  { %v3130_v9 = vadd.f32 %v3521_v60, %v3236_v2  ;;  %v3124_v63 = vpop.f32.mrb[19].mxu1 }
 0xbb7   :  { %v3125_v43 = vadd.f32 %v3236_v2, %v3124_v63 }
 0xbb8   :  { %v3137_v25 = vsel %vm3133_vm0, %v3130_v9, -inf }
 0xbb9   :  { %3138 = vmax.xlane.f32.xlu0 %v3137_v25  ;;  %v3134_v21 = vsel %vm3133_vm0, %v3125_v43, -inf }
 0xbba   :  { %3135 = vmax.xlane.f32.xlu1 %v3134_v21 }
 0xc46   :  { %v3139_v8 = vpop.xlane.xlu0 %3138 }
 0xc47   :  { %v3141_v23 = vsub.f32 %v3130_v9, %v3139_v8  ;;  %v3136_v33 = vpop.xlane.xlu1 %3135 }
 0xc48   :  { %v3140_v22 = vsub.f32 %v3125_v43, %v3136_v33 }
 0xc49   :  { %v3144_v4 = vmul.f32 1.442695, %v3141_v23 }
 0xc4a   :  { %v3142_v52 = vmul.f32 1.442695, %v3140_v22 }
 0xc4b   :  { %3971 = vpow2.f32 %v3144_v4 }
 0xc4c   :  { %3973 = vpow2.f32 %v3142_v52 }
 0xc55   :  { %v3972_v44 = vpop.eup %3971 }
 0xc56   :  { %v3974_v5 = vpop.eup %3973  ;;  %v3149_v29 = vsel %vm3133_vm0, %v3972_v44, 0.0 }
 0xc57   :  { %3150 = vadd.xlane.f32.xlu0 %v3149_v29  ;;  %v3146_v6 = vsel %vm3133_vm0, %v3974_v5, 0.0 }
 0xc58   :  { %3147 = vadd.xlane.f32.xlu1 %v3146_v6 }
 0xce4   :  { %v3151_v3 = vpop.xlane.xlu0 %3150 }
 0xce5   :  { %3975 = vlog2.f32 %v3151_v3  ;;  %v3148_v39 = vpop.xlane.xlu1 %3147 }
 0xce6   :  { %3977 = vlog2.f32 %v3148_v39 }
 0xcef   :  { %v3976_v58 = vpop.eup %3975 }
 0xcf0   :  { %v3978_v34 = vpop.eup %3977  ;;  %v3155_v49 = vmul.f32 0.6931472, %v3976_v58 }
 0xcf1   :  { %v3153_v46 = vmul.f32 0.6931472, %v3978_v34 }
 0xcf2   :  { %v3157_v32 = vadd.f32 %v3155_v49, %v3139_v8 }
 0xcf3   :  { %v3156_v0 = vadd.f32 %v3153_v46, %v3136_v33 }
 0xcf4   :  { %v3159_v62 = vsub.f32 %v3130_v9, %v3157_v32 }
 0xcf5   :  { %v3158_v41 = vsub.f32 %v3125_v43, %v3156_v0 }
 0xcf6   :  { %3161 = vst.msk [vmem:[%s4921_s11 + $0x8] sm:$0xff] %vm3133_vm0, %v3159_v62 }
 0xcf7   :  { %3160 = vst.msk [vmem:[%s4921_s11] sm:$0xff] %vm3133_vm0, %v3158_v41 }
 0xcf8   :  { %3166 = vsyncpa [#allocation4], 1 }

</bundles_post_ra>
